<compile_context>
chip_gen: v6e
topology: v6e:2x2x1
jax: 0.10.0
libtpu: 0.0.40
codegen_flags: <defaults>
</compile_context>

<pallas_src>
import jax
import jax.numpy as jnp
from jax.experimental import pallas as pl
from jax.experimental.pallas import tpu as pltpu


def _round_up(n, m):
    return ((n + m - 1) // m) * m


def _autoencoder_kernel(x_ref, we_ref, be_ref, wd_ref, bd_ref, o_ref):
    # Cast the activation tile to the weights' dtype in-kernel (VPU cast, free
    # filler under the MXU work); no-op on the f32 path.
    x = x_ref[...].astype(we_ref.dtype)
    # Encoder matmul: (tb, D_in) @ (D_in, H), f32 accumulation on the MXU.
    h = jnp.dot(x, we_ref[...], preferred_element_type=jnp.float32)
    h = h + be_ref[...]                        # f32 bias add (VPU)
    h = h.astype(wd_ref.dtype)                 # feed MXU in the weights' dtype
    # Decoder matmul: (tb, H) @ (H, D_in), f32 accumulation.
    y = jnp.dot(h, wd_ref[...], preferred_element_type=jnp.float32)
    y = y + bd_ref[...]                        # f32 bias add
    # f32 tanh epilogue (EUP), then cast to the output dtype.
    o_ref[...] = jnp.tanh(y).astype(o_ref.dtype)


def autoencoder_forward(x, w_enc, b_enc, w_dec, b_dec, *, tb=None,
                        matmul_dtype=None):
    """Fused forward: tanh((x @ w_enc + b_enc) @ w_dec + b_dec).

    x: (B, D_in); w_enc: (D_in, H); b_enc: (1, H); w_dec: (H, D_in); b_dec: (1, D_in).
    matmul_dtype: optional low-precision dtype (e.g. jnp.bfloat16) for the
        matmul operands; x is cast inside the kernel, only the weights are cast
        here (callers holding bf16 weights avoid even that).  Bias add, tanh
        and the output stay f32 / x.dtype.
    """
    B, D_in = x.shape
    H = w_enc.shape[1]
    out_dtype = x.dtype

    # Batch tile: 128 rows keeps the MXU fed while giving ceil(B/128) grid
    # steps for DMA/compute overlap (v5e/v6e) and megacore sharding (v7x).
    # The final partial block (B not a multiple of tb) is masked by Pallas —
    # no wrapper-side padding or output slicing.
    if tb is None:
        tb = min(128, _round_up(B, 8))
    tb = max(8, min(tb, _round_up(B, 8)))
    grid_b = pl.cdiv(B, tb)

    if matmul_dtype is not None:
        w_enc = w_enc.astype(matmul_dtype)
        w_dec = w_dec.astype(matmul_dtype)
    b_enc = b_enc.astype(jnp.float32)
    b_dec = b_dec.astype(jnp.float32)

    # Advisory cost estimate for XLA's scheduler around the custom call.
    cost = pl.CostEstimate(
        flops=4 * B * D_in * H,              # two matmuls (2 flops/MAC each)
        transcendentals=B * D_in,            # tanh
        bytes_accessed=(x.size * x.dtype.itemsize
                        + w_enc.size * w_enc.dtype.itemsize
                        + w_dec.size * w_dec.dtype.itemsize
                        + (H + D_in) * 4
                        + B * D_in * jnp.dtype(out_dtype).itemsize),
    )

    xtm = x.dtype.itemsize
    wtm = w_enc.dtype.itemsize
    otm = jnp.dtype(out_dtype).itemsize
    # x/out tiles double-buffered, weights single-buffered, plus the in-kernel
    # f32 intermediates h (tb, H) and y (tb, D_in).
    vmem_est = (2 * tb * D_in * xtm                       # x tiles
                + 2 * tb * D_in * otm                     # out tiles
                + (D_in * H + H * D_in) * wtm             # weights (1 buffer)
                + (H + D_in) * 4                          # biases
                + tb * H * 4 + tb * D_in * 4)             # h, y intermediates

    compiler_kwargs = dict(dimension_semantics=("parallel",))
    if vmem_est > 28 * 1024 * 1024:
        try:
            vmem_cap = pltpu.get_tpu_info().vmem_capacity_bytes
        except Exception:
            vmem_cap = 64 * 1024 * 1024       # v7x floor: safe on every chip
        compiler_kwargs["vmem_limit_bytes"] = min(
            vmem_cap - 8 * 1024 * 1024, vmem_est + 8 * 1024 * 1024)
    # TODO(synk): for D_in/H of a few thousand and up, add a K/N-blocked
    # variant (reduction grid axis + f32 VMEM accumulator under pl.when) so the
    # weights need not be fully VMEM-resident (v7x has only 64 MiB per TC).

    def call(weight_mode):
        def wspec(shape):
            return pl.BlockSpec(shape, lambda i: (0, 0),
                                pipeline_mode=weight_mode)
        return pl.pallas_call(
            _autoencoder_kernel,
            out_shape=jax.ShapeDtypeStruct((B, D_in), out_dtype),
            grid_spec=pltpu.PrefetchScalarGridSpec(
                num_scalar_prefetch=0,
                grid=(grid_b,),
                in_specs=[
                    pl.BlockSpec((tb, D_in), lambda i: (i, 0)),   # x tile
                    wspec((D_in, H)),                             # encoder weight
                    wspec((1, H)),                                # encoder bias
                    wspec((H, D_in)),                             # decoder weight
                    wspec((1, D_in)),                             # decoder bias
                ],
                out_specs=pl.BlockSpec((tb, D_in), lambda i: (i, 0)),
            ),
            compiler_params=pltpu.CompilerParams(**compiler_kwargs),
            cost_estimate=cost,
        )(x, w_enc, b_enc, w_dec, b_dec)

    try:
        # Weights/biases have constant block indices, so they are DMA'd once;
        # single-buffering them halves their VMEM footprint (matters on v7x's
        # 64 MiB VMEM once D_in/H grow).
        return call(pl.Buffered(1))
    except Exception:
        # Installed Pallas rejects Buffered(1): keep default double buffering.
        return call(None)


if __name__ == "__main__":
    # Module shapes: n_input_nodes=256, n_hidden_nodes=128.  Batch of 300 is
    # not a tile multiple, so it exercises the masked partial final block and
    # yields a 3-step "parallel" grid (128 + 128 + 44 rows).
    B, D_in, H = 300, 256, 128

    key = jax.random.PRNGKey(0)
    kx, k1, k2, k3, k4 = jax.random.split(key, 5)

    x = jax.random.normal(kx, (B, D_in), dtype=jnp.float32)

    # Deterministic parameter init (PyTorch nn.Linear-like uniform ranges).
    bound_enc = 1.0 / (D_in ** 0.5)
    bound_dec = 1.0 / (H ** 0.5)
    w_enc = jax.random.uniform(k1, (D_in, H), jnp.float32, -bound_enc, bound_enc)
    b_enc = jax.random.uniform(k2, (1, H), jnp.float32, -bound_enc, bound_enc)
    w_dec = jax.random.uniform(k3, (H, D_in), jnp.float32, -bound_dec, bound_dec)
    b_dec = jax.random.uniform(k4, (1, D_in), jnp.float32, -bound_dec, bound_dec)

    # Pure-JAX reference.
    ref = jnp.tanh((x @ w_enc + b_enc) @ w_dec + b_dec)

    # f32 path (strict check).
    out = jax.block_until_ready(
        autoencoder_forward(x, w_enc, b_enc, w_dec, b_dec))
    assert out.shape == (B, D_in)
    assert jnp.allclose(out, ref, atol=1e-5, rtol=1e-5)

    # bf16 matmul-operand path (native MXU rate on v5e/v6e/v7x), f32
    # accumulation and f32 bias/tanh epilogue — looser tolerance.
    out_bf16 = jax.block_until_ready(
        autoencoder_forward(x, w_enc, b_enc, w_dec, b_dec,
                            matmul_dtype=jnp.bfloat16))
    assert out_bf16.shape == (B, D_in)
    assert jnp.allclose(out_bf16, ref, atol=5e-2, rtol=5e-2)

    print("KERNEL_OK")
</pallas_src>

<mosaic_0001>
module attributes {stable_mosaic.version = 11 : i64} {
  func.func @_autoencoder_kernel(%arg0: i32, %arg1: memref<128x256xf32, #tpu.memory_space<vmem>>, %arg2: memref<256x128xf32, #tpu.memory_space<vmem>>, %arg3: memref<1x128xf32, #tpu.memory_space<vmem>>, %arg4: memref<128x256xf32, #tpu.memory_space<vmem>>, %arg5: memref<1x256xf32, #tpu.memory_space<vmem>>, %arg6: memref<128x256xf32, #tpu.memory_space<vmem>>) attributes {dimension_semantics = [#tpu.dimension_semantics<parallel>], iteration_bounds = array<i64: 3>, scalar_prefetch = 0 : i64, scratch_operands = 0 : i64, tpu.core_type = #tpu.core_type<tc>, window_params = [{transform_indices = @transform_0, window_bounds = array<i64: 128, 256>}, {pipeline_mode = #tpu.pipeline_mode<synchronous>, transform_indices = @transform_1, window_bounds = array<i64: 256, 128>}, {pipeline_mode = #tpu.pipeline_mode<synchronous>, transform_indices = @transform_2, window_bounds = array<i64: 1, 128>}, {pipeline_mode = #tpu.pipeline_mode<synchronous>, transform_indices = @transform_3, window_bounds = array<i64: 128, 256>}, {pipeline_mode = #tpu.pipeline_mode<synchronous>, transform_indices = @transform_4, window_bounds = array<i64: 1, 256>}, {transform_indices = @transform_5, window_bounds = array<i64: 128, 256>}]} {
    %c0 = arith.constant 0 : index
    %c0_0 = arith.constant 0 : index
    %0 = vector.load %arg1[%c0, %c0_0] : memref<128x256xf32, #tpu.memory_space<vmem>>, vector<128x256xf32>
    %c0_1 = arith.constant 0 : index
    %c0_2 = arith.constant 0 : index
    %1 = vector.load %arg2[%c0_1, %c0_2] : memref<256x128xf32, #tpu.memory_space<vmem>>, vector<256x128xf32>
    %cst = arith.constant dense<0.000000e+00> : vector<128x128xf32>
    %2 = tpu.matmul %0, %1, %cst {dimension_numbers = #tpu.dot_dimension_numbers<[1], [0], [0], [1], [0, 0, 1, 1], [], []>} : vector<128x256xf32>, vector<256x128xf32>, vector<128x128xf32> -> vector<128x128xf32>
    %c0_3 = arith.constant 0 : index
    %c0_4 = arith.constant 0 : index
    %3 = vector.load %arg3[%c0_3, %c0_4] : memref<1x128xf32, #tpu.memory_space<vmem>>, vector<1x128xf32>
    %4 = vector.broadcast %3 : vector<1x128xf32> to vector<128x128xf32>
    %5 = arith.addf %2, %4 : vector<128x128xf32>
    %c0_5 = arith.constant 0 : index
    %c0_6 = arith.constant 0 : index
    %6 = vector.load %arg4[%c0_5, %c0_6] : memref<128x256xf32, #tpu.memory_space<vmem>>, vector<128x256xf32>
    %cst_7 = arith.constant dense<0.000000e+00> : vector<128x256xf32>
    %7 = tpu.matmul %5, %6, %cst_7 {dimension_numbers = #tpu.dot_dimension_numbers<[1], [0], [0], [1], [0, 0, 1, 1], [], []>} : vector<128x128xf32>, vector<128x256xf32>, vector<128x256xf32> -> vector<128x256xf32>
    %c0_8 = arith.constant 0 : index
    %c0_9 = arith.constant 0 : index
    %8 = vector.load %arg5[%c0_8, %c0_9] : memref<1x256xf32, #tpu.memory_space<vmem>>, vector<1x256xf32>
    %9 = vector.broadcast %8 : vector<1x256xf32> to vector<128x256xf32>
    %10 = arith.addf %7, %9 : vector<128x256xf32>
    %11 = math.tanh %10 : vector<128x256xf32>
    %c0_10 = arith.constant 0 : index
    %c0_11 = arith.constant 0 : index
    %12 = vector.load %arg6[%c0_10, %c0_11] : memref<128x256xf32, #tpu.memory_space<vmem>>, vector<128x256xf32>
    tpu.vector_store %arg6[%c0_10, %c0_11], %11 {strides = array<i32>} : memref<128x256xf32, #tpu.memory_space<vmem>>, vector<128x256xf32>,
    return
  }
  func.func @transform_0(%arg0: i32) -> (i32, i32) {
    %c0_i32 = arith.constant 0 : i32
    %c0_i32_0 = arith.constant 0 : i32
    return %arg0, %c0_i32 : i32, i32
  }
  func.func @transform_1(%arg0: i32) -> (i32, i32) {
    %c0_i32 = arith.constant 0 : i32
    %c0_i32_0 = arith.constant 0 : i32
    %c0_i32_1 = arith.constant 0 : i32
    return %c0_i32, %c0_i32_0 : i32, i32
  }
  func.func @transform_2(%arg0: i32) -> (i32, i32) {
    %c0_i32 = arith.constant 0 : i32
    %c0_i32_0 = arith.constant 0 : i32
    %c0_i32_1 = arith.constant 0 : i32
    return %c0_i32, %c0_i32_0 : i32, i32
  }
  func.func @transform_3(%arg0: i32) -> (i32, i32) {
    %c0_i32 = arith.constant 0 : i32
    %c0_i32_0 = arith.constant 0 : i32
    %c0_i32_1 = arith.constant 0 : i32
    return %c0_i32, %c0_i32_0 : i32, i32
  }
  func.func @transform_4(%arg0: i32) -> (i32, i32) {
    %c0_i32 = arith.constant 0 : i32
    %c0_i32_0 = arith.constant 0 : i32
    %c0_i32_1 = arith.constant 0 : i32
    return %c0_i32, %c0_i32_0 : i32, i32
  }
  func.func @transform_5(%arg0: i32) -> (i32, i32) {
    %c0_i32 = arith.constant 0 : i32
    %c0_i32_0 = arith.constant 0 : i32
    return %arg0, %c0_i32 : i32, i32
  }
}

module attributes {stable_mosaic.version = 11 : i64} {
  func.func @_autoencoder_kernel(%arg0: i32, %arg1: memref<128x256xf32, #tpu.memory_space<vmem>>, %arg2: memref<256x128xf32, #tpu.memory_space<vmem>>, %arg3: memref<1x128xf32, #tpu.memory_space<vmem>>, %arg4: memref<128x256xf32, #tpu.memory_space<vmem>>, %arg5: memref<1x256xf32, #tpu.memory_space<vmem>>, %arg6: memref<128x256xf32, #tpu.memory_space<vmem>>) attributes {dimension_semantics = [#tpu.dimension_semantics<parallel>], iteration_bounds = array<i64: 3>, scalar_prefetch = 0 : i64, scratch_operands = 0 : i64, tpu.core_type = #tpu.core_type<tc>, window_params = [{transform_indices = @transform_0, window_bounds = array<i64: 128, 256>}, {pipeline_mode = #tpu.pipeline_mode<synchronous>, transform_indices = @transform_1, window_bounds = array<i64: 256, 128>}, {pipeline_mode = #tpu.pipeline_mode<synchronous>, transform_indices = @transform_2, window_bounds = array<i64: 1, 128>}, {pipeline_mode = #tpu.pipeline_mode<synchronous>, transform_indices = @transform_3, window_bounds = array<i64: 128, 256>}, {pipeline_mode = #tpu.pipeline_mode<synchronous>, transform_indices = @transform_4, window_bounds = array<i64: 1, 256>}, {transform_indices = @transform_5, window_bounds = array<i64: 128, 256>}]} {
    %c0 = arith.constant 0 : index
    %c0_0 = arith.constant 0 : index
    %0 = vector.load %arg1[%c0, %c0_0] : memref<128x256xf32, #tpu.memory_space<vmem>>, vector<128x256xf32>
    %c0_1 = arith.constant 0 : index
    %c0_2 = arith.constant 0 : index
    %1 = vector.load %arg2[%c0_1, %c0_2] : memref<256x128xf32, #tpu.memory_space<vmem>>, vector<256x128xf32>
    %cst = arith.constant dense<0.000000e+00> : vector<128x128xf32>
    %2 = tpu.matmul %0, %1, %cst {dimension_numbers = #tpu.dot_dimension_numbers<[1], [0], [0], [1], [0, 0, 1, 1], [], []>} : vector<128x256xf32>, vector<256x128xf32>, vector<128x128xf32> -> vector<128x128xf32>
    %c0_3 = arith.constant 0 : index
    %c0_4 = arith.constant 0 : index
    %3 = vector.load %arg3[%c0_3, %c0_4] : memref<1x128xf32, #tpu.memory_space<vmem>>, vector<1x128xf32>
    %4 = vector.broadcast %3 : vector<1x128xf32> to vector<128x128xf32>
    %5 = arith.addf %2, %4 : vector<128x128xf32>
    %c0_5 = arith.constant 0 : index
    %c0_6 = arith.constant 0 : index
    %6 = vector.load %arg4[%c0_5, %c0_6] : memref<128x256xf32, #tpu.memory_space<vmem>>, vector<128x256xf32>
    %cst_7 = arith.constant dense<0.000000e+00> : vector<128x256xf32>
    %7 = tpu.matmul %5, %6, %cst_7 {dimension_numbers = #tpu.dot_dimension_numbers<[1], [0], [0], [1], [0, 0, 1, 1], [], []>} : vector<128x128xf32>, vector<128x256xf32>, vector<128x256xf32> -> vector<128x256xf32>
    %c0_8 = arith.constant 0 : index
    %c0_9 = arith.constant 0 : index
    %8 = vector.load %arg5[%c0_8, %c0_9] : memref<1x256xf32, #tpu.memory_space<vmem>>, vector<1x256xf32>
    %9 = vector.broadcast %8 : vector<1x256xf32> to vector<128x256xf32>
    %10 = arith.addf %7, %9 : vector<128x256xf32>
    %11 = math.tanh %10 : vector<128x256xf32>
    %c0_10 = arith.constant 0 : index
    %c0_11 = arith.constant 0 : index
    %12 = vector.load %arg6[%c0_10, %c0_11] : memref<128x256xf32, #tpu.memory_space<vmem>>, vector<128x256xf32>
    tpu.vector_store %arg6[%c0_10, %c0_11], %11 {strides = array<i32>} : memref<128x256xf32, #tpu.memory_space<vmem>>, vector<128x256xf32>,
    return
  }
  func.func @transform_0(%arg0: i32) -> (i32, i32) {
    %c0_i32 = arith.constant 0 : i32
    %c0_i32_0 = arith.constant 0 : i32
    return %arg0, %c0_i32 : i32, i32
  }
  func.func @transform_1(%arg0: i32) -> (i32, i32) {
    %c0_i32 = arith.constant 0 : i32
    %c0_i32_0 = arith.constant 0 : i32
    %c0_i32_1 = arith.constant 0 : i32
    return %c0_i32, %c0_i32_0 : i32, i32
  }
  func.func @transform_2(%arg0: i32) -> (i32, i32) {
    %c0_i32 = arith.constant 0 : i32
    %c0_i32_0 = arith.constant 0 : i32
    %c0_i32_1 = arith.constant 0 : i32
    return %c0_i32, %c0_i32_0 : i32, i32
  }
  func.func @transform_3(%arg0: i32) -> (i32, i32) {
    %c0_i32 = arith.constant 0 : i32
    %c0_i32_0 = arith.constant 0 : i32
    %c0_i32_1 = arith.constant 0 : i32
    return %c0_i32, %c0_i32_0 : i32, i32
  }
  func.func @transform_4(%arg0: i32) -> (i32, i32) {
    %c0_i32 = arith.constant 0 : i32
    %c0_i32_0 = arith.constant 0 : i32
    %c0_i32_1 = arith.constant 0 : i32
    return %c0_i32, %c0_i32_0 : i32, i32
  }
  func.func @transform_5(%arg0: i32) -> (i32, i32) {
    %c0_i32 = arith.constant 0 : i32
    %c0_i32_0 = arith.constant 0 : i32
    return %arg0, %c0_i32 : i32, i32
  }
}

</mosaic_0001>

<bundles_post_ra>
// kernel: tpu_custom_call.1
= control target key start
LH: loop header
LB: loop body
LE: loop exit
PB: predicated region body
PF: predicated region fallthrough
CT: control target
= control target key end

     0   :  { %10 = vsyncpa [#allocation3], 0  ;;  %s1690_s0 = inlined_call_operand.hbm [shape: f32[300,256], index: 0, kind: input, shape index: {}]   ;;  %s1691_s1 = inlined_call_operand.hbm [shape: f32[256,128], index: 1, kind: input, shape index: {}]   ;;  %s1692_s2 = inlined_call_operand.vmem [shape: f32[1,128], index: 2, kind: input, shape index: {}]   ;;  %s1693_s3 = inlined_call_operand.hbm [shape: f32[128,256], index: 3, kind: input, shape index: {}]   ;;  %s1694_s4 = inlined_call_operand.vmem [shape: f32[1,256], index: 4, kind: input, shape index: {}]   ;;  %s1695_s5 = inlined_call_operand.hbm [shape: f32[300,256], index: 5, kind: output, shape index: {}]  }
   0x1   :  { %12 = vsyncpa [#allocation3 + $0x1], 0 }
   0x2   :  { %13 = vsyncpa [#allocation6], 0 }
   0x3   :  { %14 = vsyncpa [#allocation4], 0 }
   0x4   :  { %16 = vsyncpa [#allocation4 + $0x1], 0  ;;  %s1332_s18 = smov 0   ;;  %s1334_s19 = smov 0  }
   0x5   :  { %s1336_s20 = smov 0   ;;  %s1338_s21 = smov 0  }
   0x6 LB: > { %s1353_s22 = sadd.s32 4294967295, %s1287_s21   ;;  %s891_s23 = sadd.s32 4294967294, %s1287_s21   ;;  %s1287_s21 = sphi %s1338_s21, %s1712_s21   ;;  %s1283_s20 = sphi %s1336_s20, %s1711_s20   ;;  %s1279_s19 = sphi %s1334_s19, %s1710_s19   ;;  %s1275_s18 = sphi %s1332_s18, %s1709_s18  }
   0x7   : > { %s1357_s24 = sadd.s32 1, %s1287_s21   ;;  %s29_s25 = sadd.s32 1, %s1283_s20 }
   0x8   : > { %s26_s26 = ssub.s32 %s1287_s21, %s1357_s24  ;;  %p36_p0 = scmp.ne.s32.totalorder %s1283_s20, %s1279_s19 }
   0x9   : > { %p27_p1 = scmp.eq.s32.totalorder %s26_s26, 0  ;;  %p37_p2 = scmp.eq.s32.totalorder %s1287_s21, 0 }
   0xa   : > { %p42_p3 = scmp.ne.s32.totalorder %s1279_s19, %s1275_s18  ;;  %p1696_p4 = scmp.eq.s32.totalorder %s1353_s22, 0 }
   0xb   : > { %s1369_s27 = scalar_select %p27_p1, %s1283_s20, %s29_s25  }
   0xc   : > { %p1371_p5 = por %p37_p2, %p36_p0  ;;  %p1377_p6 = por %p1696_p4, %p42_p3 }
   0xd   : > { %p150_p7 = scmp.eq.s32.totalorder %s1353_s22, 2  ;;  %p156_p8 = scmp.eq.s32.totalorder %s891_s23, 2 }
   0xe   : > { %s1699_s29 = scalar_select %p1377_p6, 1, 0 }
   0xf   : > { %p892_p9 = scmp.ge.s32.totalorder %s1287_s21, 1  ;;  %p163_p10 = scmp.lt.s32.totalorder %s1287_s21, 4 }
  0x10   : > { %p1384_p11 = por %p150_p7, %p36_p0  ;;  %p1388_p12 = por %p156_p8, %p42_p3 }
  0x11   : > { %p1392_p13 = pnand %p892_p9, %p163_p10  ;;  %s1289_s8 = smov [#allocation5]  }
  0x12   : > { %s1700_s30 = scalar_select %p1384_p11, 1, 0 }
  0x13   : > { %s1701_s6 = scalar_select %p1388_p12, 1, 0 }
  0x14   : > { %p1018_p1 = pneg %p1392_p13  ;;  %s175_s9 = sshll.u32 %s1289_s8, 4  ;;  %s176_s9 = int_to_ptr.vmem [resolvable:$true] %s175_s9 }
  0x15   : > { %s1290_s11 = smov [#allocation7]   ;;  %s1152_s13 = scalar_lea.vmem %s176_s9, 4096 }
  0x16   : > { %p1400_p2 = pnand %p1018_p1, %p1696_p4  ;;  %s191_s12 = sshll.u32 %s1290_s11, 4  ;;  %s192_s12 = int_to_ptr.vmem [resolvable:$true] %s191_s12 }
  0x17   : > { %p1153_p3 = scmp.ne.s32.totalorder %s176_s9, %s1152_s13  ;;  %p1160_p9 = scmp.lt.s32.totalorder %s176_s9, %s176_s9 }
  0x18   : > { %p1143_p0 = pneg %p1400_p2  ;;  %p1161_p10 = scmp.lt.s32.totalorder %s1152_s13, %s1152_s13 }
  0x1a   : > { %p1155_p7 = pnand %p1153_p3, %p1143_p0  ;;  %p1162_p12 = por %p1161_p10, %p1160_p9 }
  0x1c   : > { %p1156_p8 = pneg %p1155_p7 }
  0x1e   : > { %p1163_p1 = pnand %p1162_p12, %p1156_p8 }
  0x20   : > { %1166 = shalt.err (!%p1163_p1)
}
  0x21   : > { %s1291_s14 = smov 128   ;;  %s1292_s15 = smov 8  }
  0x22   : > { %1021 = dma.hbm_to_vmem [thread:$0]  (!%p1400_p2), %s1691_s1, 4096, %s176_s9, [#allocation6], %s1291_s14, %s1291_s14, %s1292_s15  }
  0x23   : > { %s1178_s23 = scalar_lea.vmem %s192_s12, 4096  ;;  %p1186_p11 = scmp.lt.s32.totalorder %s192_s12, %s192_s12 }
  0x24   : > { %p1179_p4 = scmp.ne.s32.totalorder %s192_s12, %s1178_s23  ;;  %p1187_p6 = scmp.lt.s32.totalorder %s1178_s23, %s1178_s23 }
  0x26   : > { %p1181_p3 = pnand %p1179_p4, %p1143_p0  ;;  %p1188_p9 = por %p1187_p6, %p1186_p11 }
  0x28   : > { %p1182_p7 = pneg %p1181_p3 }
  0x2a   : > { %p1189_p12 = pnand %p1188_p9, %p1182_p7 }
  0x2c   : > { %1192 = shalt.err (!%p1189_p12)
}
  0x2d   : > { %s1293_s25 = smov 256   ;;  %s1294_s26 = smov 16  }
  0x2e   : > { %1024 = dma.hbm_to_vmem [thread:$0]  (!%p1400_p2), %s1693_s3, 4096, %s192_s12, [#allocation6], %s1293_s25, %s1293_s25, %s1294_s26  }
  0x2f   : > { %p895_p8 = scmp.ge.s32.totalorder %s1287_s21, 3 }
  0x31   : > { %204 = sbr.rel (%p895_p8) target bundleno = 86 (0x56), region = 32 }
  0x36   : > { %207 = sbr.rel (!%p1371_p5) target bundleno = 86 (0x56), region = 36  ;;  %s208_s9 = sand.u32 (%p1371_p5), 1, %s1283_s20  }
  0x37   : > { %s897_s13 = sshll.u32 (%p1371_p5), %s1287_s21, 4  ;;  %s896_s14 = sshll.u32 (%p1371_p5), %s208_s9, 8 }
  0x38   : > { %s214_s15 = ssub.s32 (%p1371_p5), 38, %s897_s13  ;;  %s1430_s17 = scalar_lea.sflag (%p1371_p5), [#allocation3], %s208_s9 }
  0x39   : > { %p215_p4 = scmp.lt.s32.totalorder (%p1371_p5), %s214_s15, 16  ;;  %s212_s12 = scalar_lea.vmem (%p1371_p5), [#allocation2], %s896_s14 }
  0x3b   : > { %s1714_s15 = smov (!%p215_p4, %s214_s15), 16 }
  0x3c   : > { %s1427_s16 = sshll.u32 %s1714_s15, 8 }
  0x3d   : > { %s220_s10 = ssub.s32 4096, %s1427_s16 }
  0x3e   : > { %221 = vsyncadd %s1430_s17, %s220_s10  ;;  %p900_p5 = scmp.ne.s32.totalorder %s1427_s16, 0  ;;  %s924_s28 = sshll.u32 %s1287_s21, 12 }
  0x3f   : > { %s1438_s26 = scalar_lea.hbm %s1690_s0, %s924_s28  ;;  %s227_s8 = sshll.u32 %s212_s12, 4  ;;  %s1440_s8 = int_to_ptr.vmem [resolvable:$true] %s227_s8 }
  0x40   : > { %s1193_s11 = scalar_lea.hbm %s1438_s26, %s1427_s16  ;;  %s1197_s14 = scalar_lea.hbm %s1690_s0, 9728 }
  0x41   : > { %p1194_p6 = scmp.ne.s32.totalorder %s1438_s26, %s1193_s11  ;;  %p1198_p0 = scmp.lt.s32.totalorder %s1438_s26, %s1690_s0 }
  0x42   : > { %p1199_p10 = scmp.lt.s32.totalorder %s1197_s14, %s1193_s11 }
  0x43   : > { %p1195_p11 = pnand %p1194_p6, %p900_p5 }
  0x44   : > { %p1200_p1 = por %p1199_p10, %p1198_p0 }
  0x45   : > { %p1196_p2 = pneg %p1195_p11 }
  0x47   : > { %p1201_p3 = pnand %p1200_p1, %p1196_p2 }
  0x49   : > { %1204 = shalt.err (!%p1201_p3)
}
  0x4a   : > { %s1205_s12 = scalar_lea.vmem %s1440_s8, %s1427_s16  ;;  %s1295_s28 = smov [#allocation2]  }
  0x4b   : > { %p1206_p7 = scmp.ne.s32.totalorder %s1440_s8, %s1205_s12  ;;  %s1209_s23 = sshll.u32 %s1295_s28, 4  ;;  %s1210_s23 = int_to_ptr.vmem [resolvable:$false] %s1209_s23 }
  0x4c   : > { %s1211_s25 = scalar_lea.vmem %s1210_s23, 8192  ;;  %p1212_p8 = scmp.lt.s32.totalorder %s1440_s8, %s1210_s23 }
  0x4d   : > { %p1207_p9 = pnand %p1206_p7, %p900_p5  ;;  %p1213_p4 = scmp.lt.s32.totalorder %s1211_s25, %s1205_s12 }
  0x4f   : > { %p1208_p12 = pneg %p1207_p9  ;;  %p1214_p6 = por %p1213_p4, %p1212_p8 }
  0x51   : > { %p1215_p11 = pnand %p1214_p6, %p1208_p12 }
  0x53   : > { %1218 = shalt.err (!%p1215_p11)
}
  0x54   : > { %s1296_s11 = smov 256   ;;  %s1297_s9 = smov 16  }
  0x55   : > { %233 = dma.hbm_to_vmem [thread:$0]  (%p900_p5), %s1438_s26, %s1427_s16, %s1440_s8, %s1430_s17, %s1296_s11, %s1296_s11, %s1297_s9  }
  0x56 PF: > { %239 = sbr.rel (%p1392_p13) target bundleno = 626 (0x272), region = 40  ;;  %s1469_s13 = sand.u32 (!%p1392_p13), 1, %s1279_s19  }
  0x57   : > { %s906_s14 = sshll.u32 (!%p1392_p13), %s1469_s13, 8  ;;  %s242_s15 = scalar_lea.sflag (!%p1392_p13), [#allocation3], %s1469_s13 }
  0x58   : > { %s1475_s10 = scalar_lea.vmem (!%p1392_p13), [#allocation2], %s906_s14  ;;  %p1704_p2 = scmp.ne.s32.totalorder (!%p1392_p13), %s1699_s29, 0 }
  0x5b   : > { %1262 = dma.done.wait (%p1704_p2), %s242_s15, 4096  }
  0x5c   : > { %1264 = vsyncadd (%p1704_p2), %s242_s15, 4294963200  ;;  %p1705_p5 = scmp.eq.s32.totalorder %s1353_s22, 0 }
  0x5e   : > { %1266 = dma.done.wait (%p1705_p5), [#allocation6], 8192   ;;  %p1706_p13 = pmov %p1705_p5 }
  0x5f   : > { %v355_v0 = vld [vmem:[#allocation5 + $0xf8] sm:$0xff]  ;;  %v354_v2 = vld [vmem:[#allocation5 + $0xf0] sm:$0xff]  ;;  %v353_v4 = vld [vmem:[#allocation5 + $0xe8] sm:$0xff]  ;;  %s1571_s26 = scalar_lea.vmem [#allocation8], %s906_s14  ;;  %s778_s8 = scalar_lea.sflag [#allocation4], %s1469_s13 }
  0x60   : > { %1268 = vsyncadd (%p1706_p13), [#allocation6], 4294959104  ;;  %v339_v1 = vld [vmem:[#allocation5 + $0x78] sm:$0xff]  ;;  %928 = vmatprep.subr.mxu0 %v355_v0  ;;  %v338_v3 = vld [vmem:[#allocation5 + $0x70] sm:$0xff]  ;;  %p1707_p0 = scmp.ne.s32.totalorder %s1700_s30, 0 }
  0x61   : > { %929 = vmatpush3.msra.mxu0 %v339_v1  ;;  %v337_v5 = vld [vmem:[#allocation5 + $0x68] sm:$0xff]  ;;  %v352_v6 = vld [vmem:[#allocation5 + $0xe0] sm:$0xff]  ;;  %v351_v8 = vld [vmem:[#allocation5 + $0xd8] sm:$0xff]  ;;  %s912_s12 = sshll.u32 (%p1707_p0), %s1353_s22, 4 }
  0x62   : > { %930 = vmatprep.subr.mxu0 %v354_v2  ;;  %v336_v7 = vld [vmem:[#allocation5 + $0x60] sm:$0xff]  ;;  %v335_v9 = vld [vmem:[#allocation5 + $0x58] sm:$0xff]  ;;  %v350_v10 = vld [vmem:[#allocation5 + $0xd0] sm:$0xff]  ;;  %s786_s28 = ssub.s32 (%p1707_p0), 38, %s912_s12 }
  0x63   : > { %931 = vmatpush3.msra.mxu0 %v338_v3  ;;  %v334_v11 = vld [vmem:[#allocation5 + $0x50] sm:$0xff]  ;;  %v349_v12 = vld [vmem:[#allocation5 + $0xc8] sm:$0xff]  ;;  %v348_v15 = vld [vmem:[#allocation5 + $0xc0] sm:$0xff]  ;;  %p787_p10 = scmp.lt.s32.totalorder (%p1707_p0), %s786_s28, 16 }
  0x64   : > { %932 = vmatprep.subr.mxu0 %v353_v4  ;;  %v293_v13 = vld [vmem:[%s1475_s10 + $0x8] sm:$0xff]  ;;  %v332_v16 = vld [vmem:[#allocation5 + $0x40] sm:$0xff]  ;;  %v347_v17 = vld [vmem:[#allocation5 + $0xb8] sm:$0xff] }
  0x65   : > { %933 = vmatpush3.msra.mxu0 %v337_v5  ;;  %v333_v14 = vld [vmem:[#allocation5 + $0x48] sm:$0xff]  ;;  %427 = vmatprep.mubr.f32.mxu0 %v293_v13  ;;  %v331_v18 = vld [vmem:[#allocation5 + $0x38] sm:$0xff]  ;;  %v346_v19 = vld [vmem:[#allocation5 + $0xb0] sm:$0xff] }
  0x66   : > { %934 = vmatprep.subr.mxu0 %v352_v6  ;;  %v330_v20 = vld [vmem:[#allocation5 + $0x30] sm:$0xff]  ;;  %v345_v21 = vld [vmem:[#allocation5 + $0xa8] sm:$0xff]  ;;  %v344_v23 = vld [vmem:[#allocation5 + $0xa0] sm:$0xff] }
  0x67   : > { %935 = vmatpush3.msra.mxu0 %v336_v7  ;;  %v329_v22 = vld [vmem:[#allocation5 + $0x28] sm:$0xff]  ;;  %v328_v24 = vld [vmem:[#allocation5 + $0x20] sm:$0xff]  ;;  %v539_v25 = vld [vmem:[#allocation7 + $0xf8] sm:$0xff] }
  0x68   : > { %936 = vmatprep.subr.mxu0 %v351_v8  ;;  %v538_v26 = vld [vmem:[#allocation7 + $0xf0] sm:$0xff]  ;;  %v343_v27 = vld [vmem:[#allocation5 + $0x98] sm:$0xff]  ;;  %552 = vmatprep.subr.mxu1 %v539_v25  ;;  %v537_v28 = vld [vmem:[#allocation7 + $0xe8] sm:$0xff] }
  0x69   : > { %937 = vmatpush3.msra.mxu0 %v335_v9  ;;  %v536_v29 = vld [vmem:[#allocation7 + $0xe0] sm:$0xff]  ;;  %v327_v30 = vld [vmem:[#allocation5 + $0x18] sm:$0xff]  ;;  %553 = vmatpush1.msra.mxu1 %v538_v26  ;;  %v342_v32 = vld [vmem:[#allocation5 + $0x90] sm:$0xff] }
  0x6a   : > { %938 = vmatprep.subr.mxu0 %v350_v10  ;;  %v535_v31 = vld [vmem:[#allocation7 + $0xd8] sm:$0xff]  ;;  %554 = vmatprep.subr.mxu1 %v537_v28  ;;  %v534_v33 = vld [vmem:[#allocation7 + $0xd0] sm:$0xff]  ;;  %v533_v35 = vld [vmem:[#allocation7 + $0xc8] sm:$0xff] }
  0x6b   : > { %939 = vmatpush3.msra.mxu0 %v334_v11  ;;  %v326_v34 = vld [vmem:[#allocation5 + $0x10] sm:$0xff]  ;;  %555 = vmatpush1.msra.mxu1 %v536_v29  ;;  %v341_v36 = vld [vmem:[#allocation5 + $0x88] sm:$0xff]  ;;  %v532_v37 = vld [vmem:[#allocation7 + $0xc0] sm:$0xff] }
  0x6c   : > { %940 = vmatprep.subr.mxu0 %v349_v12  ;;  %556 = vmatprep.subr.mxu1 %v535_v31  ;;  %v325_v38 = vld [vmem:[#allocation5 + $0x8] sm:$0xff]  ;;  %v531_v39 = vld [vmem:[#allocation7 + $0xb8] sm:$0xff]  ;;  %v340_v40 = vld [vmem:[#allocation5 + $0x80] sm:$0xff] }
  0x6d   : > { %941 = vmatpush3.msra.mxu0 %v333_v14  ;;  %557 = vmatpush1.msra.mxu1 %v534_v33  ;;  %v530_v41 = vld [vmem:[#allocation7 + $0xb0] sm:$0xff]  ;;  %v324_v42 = vld [vmem:[#allocation5] sm:$0xff]  ;;  %v529_v43 = vld [vmem:[#allocation7 + $0xa8] sm:$0xff] }
  0x6e   : > { %942 = vmatprep.subr.mxu0 %v348_v15  ;;  %558 = vmatprep.subr.mxu1 %v533_v35  ;;  %v292_v44 = vld [vmem:[%s1475_s10] sm:$0xff]  ;;  %v295_v46 = vld [vmem:[%s1475_s10 + $0x18] sm:$0xff]  ;;  %v526_v48 = vld [vmem:[#allocation7 + $0x90] sm:$0xff] }
  0x6f   : > { %943 = vmatpush3.msra.mxu0 %v332_v16  ;;  %559 = vmatpush1.msra.mxu1 %v532_v37  ;;  %v528_v45 = vld [vmem:[#allocation7 + $0xa0] sm:$0xff]  ;;  %v527_v47 = vld [vmem:[#allocation7 + $0x98] sm:$0xff]  ;;  %v525_v49 = vld [vmem:[#allocation7 + $0x88] sm:$0xff] }
  0x70   : > { %944 = vmatprep.subr.mxu0 %v347_v17  ;;  %560 = vmatprep.subr.mxu1 %v531_v39  ;;  %v294_v50 = vld [vmem:[%s1475_s10 + $0x10] sm:$0xff]  ;;  %v524_v51 = vld [vmem:[#allocation7 + $0x80] sm:$0xff]  ;;  %v297_v52 = vld [vmem:[%s1475_s10 + $0x28] sm:$0xff] }
  0x71   : > { %945 = vmatpush3.msra.mxu0 %v331_v18  ;;  %561 = vmatpush1.msra.mxu1 %v530_v41  ;;  %v523_v53 = vld [vmem:[#allocation7 + $0x78] sm:$0xff]  ;;  %v522_v54 = vld [vmem:[#allocation7 + $0x70] sm:$0xff]  ;;  %v521_v55 = vld [vmem:[#allocation7 + $0x68] sm:$0xff] }
  0x72   : > { %946 = vmatprep.subr.mxu0 %v346_v19  ;;  %562 = vmatprep.subr.mxu1 %v529_v43  ;;  %v296_v56 = vld [vmem:[%s1475_s10 + $0x20] sm:$0xff]  ;;  %v299_v58 = vld [vmem:[%s1475_s10 + $0x38] sm:$0xff]  ;;  %v518_v60 = vld [vmem:[#allocation7 + $0x50] sm:$0xff] }
  0x73   : > { %947 = vmatpush3.msra.mxu0 %v330_v20  ;;  %563 = vmatpush1.msra.mxu1 %v528_v45  ;;  %v520_v57 = vld [vmem:[#allocation7 + $0x60] sm:$0xff]  ;;  %v519_v59 = vld [vmem:[#allocation7 + $0x58] sm:$0xff]  ;;  %v517_v61 = vld [vmem:[#allocation7 + $0x48] sm:$0xff] }
  0x74   : > { %948 = vmatprep.subr.mxu0 %v345_v21  ;;  %564 = vmatprep.subr.mxu1 %v527_v47  ;;  %v298_v62 = vld [vmem:[%s1475_s10 + $0x30] sm:$0xff]  ;;  %v516_v63 = vld [vmem:[#allocation7 + $0x40] sm:$0xff]  ;;  %v301_v0 = vld [vmem:[%s1475_s10 + $0x48] sm:$0xff] }
  0x75   : > { %949 = vmatpush3.msra.mxu0 %v329_v22  ;;  %565 = vmatpush1.msra.mxu1 %v526_v48  ;;  %v515_v1 = vld [vmem:[#allocation7 + $0x38] sm:$0xff]  ;;  %v300_v2 = vld [vmem:[%s1475_s10 + $0x40] sm:$0xff]  ;;  %v302_v4 = vld [vmem:[%s1475_s10 + $0x50] sm:$0xff] }
  0x76   : > { %950 = vmatprep.subr.mxu0 %v344_v23  ;;  %566 = vmatprep.subr.mxu1 %v525_v49  ;;  %v303_v3 = vld [vmem:[%s1475_s10 + $0x58] sm:$0xff]  ;;  %v305_v5 = vld [vmem:[%s1475_s10 + $0x68] sm:$0xff]  ;;  %v304_v6 = vld [vmem:[%s1475_s10 + $0x60] sm:$0xff] }
  0x77   : > { %951 = vmatpush3.msra.mxu0 %v328_v24  ;;  %567 = vmatpush1.msra.mxu1 %v524_v51  ;;  %v307_v7 = vld [vmem:[%s1475_s10 + $0x78] sm:$0xff]  ;;  %v306_v8 = vld [vmem:[%s1475_s10 + $0x70] sm:$0xff]  ;;  %v309_v9 = vld [vmem:[%s1475_s10 + $0x88] sm:$0xff] }
  0x78   : > { %952 = vmatprep.subr.mxu0 %v343_v27  ;;  %568 = vmatprep.subr.mxu1 %v523_v53  ;;  %v308_v10 = vld [vmem:[%s1475_s10 + $0x80] sm:$0xff]  ;;  %v311_v11 = vld [vmem:[%s1475_s10 + $0x98] sm:$0xff]  ;;  %v310_v12 = vld [vmem:[%s1475_s10 + $0x90] sm:$0xff] }
  0x79   : > { %953 = vmatpush3.msra.mxu0 %v327_v30  ;;  %569 = vmatpush1.msra.mxu1 %v522_v54  ;;  %v313_v13 = vld [vmem:[%s1475_s10 + $0xa8] sm:$0xff]  ;;  %v312_v14 = vld [vmem:[%s1475_s10 + $0xa0] sm:$0xff]  ;;  %v315_v15 = vld [vmem:[%s1475_s10 + $0xb8] sm:$0xff] }
  0x7a   : > { %954 = vmatprep.subr.mxu0 %v342_v32  ;;  %570 = vmatprep.subr.mxu1 %v521_v55  ;;  %v314_v16 = vld [vmem:[%s1475_s10 + $0xb0] sm:$0xff]  ;;  %v317_v17 = vld [vmem:[%s1475_s10 + $0xc8] sm:$0xff]  ;;  %v316_v18 = vld [vmem:[%s1475_s10 + $0xc0] sm:$0xff]  ;;  %v1298_v32 = vmov 0.0  }
  0x7b   : > { %955 = vmatpush3.msra.mxu0 %v326_v34  ;;  %571 = vmatpush1.msra.mxu1 %v520_v57  ;;  %v319_v19 = vld [vmem:[%s1475_s10 + $0xd8] sm:$0xff]  ;;  %v318_v20 = vld [vmem:[%s1475_s10 + $0xd0] sm:$0xff]  ;;  %v321_v21 = vld [vmem:[%s1475_s10 + $0xe8] sm:$0xff] }
  0x7c   : > { %956 = vmatprep.subr.mxu0 %v341_v36  ;;  %572 = vmatprep.subr.mxu1 %v519_v59  ;;  %v320_v22 = vld [vmem:[%s1475_s10 + $0xe0] sm:$0xff]  ;;  %v323_v23 = vld [vmem:[%s1475_s10 + $0xf8] sm:$0xff]  ;;  %v322_v24 = vld [vmem:[%s1475_s10 + $0xf0] sm:$0xff] }
  0x7d   : > { %957 = vmatpush3.msra.mxu0 %v325_v38  ;;  %573 = vmatpush1.msra.mxu1 %v518_v60  ;;  %v514_v25 = vld [vmem:[#allocation7 + $0x30] sm:$0xff]  ;;  %v513_v26 = vld [vmem:[#allocation7 + $0x28] sm:$0xff]  ;;  %v512_v27 = vld [vmem:[#allocation7 + $0x20] sm:$0xff] }
  0x7e   : > { %958 = vmatprep.subr.mxu0 %v340_v40  ;;  %574 = vmatprep.subr.mxu1 %v517_v61  ;;  %v511_v28 = vld [vmem:[#allocation7 + $0x18] sm:$0xff]  ;;  %v510_v29 = vld [vmem:[#allocation7 + $0x10] sm:$0xff]  ;;  %v509_v30 = vld [vmem:[#allocation7 + $0x8] sm:$0xff] }
  0x7f   : > { %959 = vmatpush3.msra.mxu0 %v324_v42  ;;  %575 = vmatpush1.msra.mxu1 %v516_v63  ;;  %v508_v31 = vld [vmem:[#allocation7] sm:$0xff] }
  0x80   : > { %428 = vmatmul.mubr.f32.vlgmr.msra.gmra.mxu0 %v292_v44  ;;  %576 = vmatprep.subr.mxu1 %v515_v1  ;;  %v1521_v34 = vld [vmem:[%s1692_s2] ss:$0 sm:$0xff] }
  0x81   : > { %432 = vmatprep.mubr.f32.mxu0 %v295_v46  ;;  %577 = vmatpush1.msra.mxu1 %v514_v25 }
  0x82   : > { %578 = vmatprep.subr.mxu1 %v513_v26  ;;  %616 = vmatprep.mubr.f32.mxu1 %v1298_v32 }
  0x83   : > { %579 = vmatpush1.msra.mxu1 %v512_v27 }
  0x84   : > { %433 = vmatmul.mubr.f32.gmra.mxu0 %v294_v50  ;;  %580 = vmatprep.subr.mxu1 %v511_v28 }
  0x85   : > { %437 = vmatprep.mubr.f32.mxu0 %v297_v52  ;;  %581 = vmatpush1.msra.mxu1 %v510_v29 }
  0x86   : > { %582 = vmatprep.subr.mxu1 %v509_v30 }
  0x87   : > { %583 = vmatpush1.msra.mxu1 %v508_v31 }
  0x88   : > { %438 = vmatmul.mubr.f32.gmra.mxu0 %v296_v56 }
  0x89   : > { %442 = vmatprep.mubr.f32.mxu0 %v299_v58 }
  0x8c   : > { %443 = vmatmul.mubr.f32.gmra.mxu0 %v298_v62 }
  0x8d   : > { %447 = vmatprep.mubr.f32.mxu0 %v301_v0 }
  0x90   : > { %448 = vmatmul.mubr.f32.gmra.mxu0 %v300_v2 }
  0x91   : > { %452 = vmatprep.mubr.f32.mxu0 %v303_v3 }
  0x94   : > { %453 = vmatmul.mubr.f32.gmra.mxu0 %v302_v4 }
  0x95   : > { %457 = vmatprep.mubr.f32.mxu0 %v305_v5 }
  0x98   : > { %458 = vmatmul.mubr.f32.gmra.mxu0 %v304_v6 }
  0x99   : > { %462 = vmatprep.mubr.f32.mxu0 %v307_v7 }
  0x9c   : > { %463 = vmatmul.mubr.f32.gmra.mxu0 %v306_v8 }
  0x9d   : > { %467 = vmatprep.mubr.f32.mxu0 %v309_v9 }
  0xa0   : > { %468 = vmatmul.mubr.f32.gmra.mxu0 %v308_v10 }
  0xa1   : > { %472 = vmatprep.mubr.f32.mxu0 %v311_v11 }
  0xa4   : > { %473 = vmatmul.mubr.f32.gmra.mxu0 %v310_v12 }
  0xa5   : > { %477 = vmatprep.mubr.f32.mxu0 %v313_v13 }
  0xa8   : > { %478 = vmatmul.mubr.f32.gmra.mxu0 %v312_v14 }
  0xa9   : > { %482 = vmatprep.mubr.f32.mxu0 %v315_v15 }
  0xac   : > { %483 = vmatmul.mubr.f32.gmra.mxu0 %v314_v16 }
  0xad   : > { %487 = vmatprep.mubr.f32.mxu0 %v317_v17 }
  0xb0   : > { %488 = vmatmul.mubr.f32.gmra.mxu0 %v316_v18 }
  0xb1   : > { %492 = vmatprep.mubr.f32.mxu0 %v319_v19 }
  0xb4   : > { %493 = vmatmul.mubr.f32.gmra.mxu0 %v318_v20 }
  0xb5   : > { %497 = vmatprep.mubr.f32.mxu0 %v321_v21 }
  0xb8   : > { %498 = vmatmul.mubr.f32.gmra.mxu0 %v320_v22 }
  0xb9   : > { %502 = vmatprep.mubr.f32.mxu0 %v323_v23 }
  0xbc   : > { %503 = vmatmul.mubr.f32.gmra.mxu0 %v322_v24 }
 0x140   : > { %v960_v33 = vpop.f32.mrf.mxu0 }
 0x142   : > { %v961_v35 = vpop.f32.mrf.mxu0 }
 0x143   : > { %v962_v36 = vadd.f32 %v961_v35, %v960_v33 }
 0x144   : > { %v963_v37 = vpop.f32.mrf.mxu0 }
 0x145   : > { %v430_v38 = vadd.f32 %v962_v36, %v1521_v34  ;;  %v542_v36 = vlaneseq }
 0x146   : > { %v964_v39 = vpop.f32.mrf.mxu0 }
 0x147   : > { %v965_v40 = vadd.f32 %v964_v39, %v963_v37  ;;  %617 = vmatmul.mubr.f32.vlgmr.msra.gmra.mxu1 %v430_v38  ;;  %v543_v37 = vshrl.u32 %v542_v36, 7  ;;  %v540_v39 = vld [vmem:[%s1694_s4] sm:$0x3] }
 0x148   : > { %v966_v41 = vpop.f32.mrf.mxu0  ;;  %622 = vmatprep.mubr.f32.mxu1 %v1298_v32 }
 0x149   : > { %v435_v42 = vadd.f32 %v965_v40, %v1521_v34  ;;  %v544_v38 = vsub.s32 0, %v543_v37  ;;  %v548_v40 = vsub.s32 1, %v543_v37 }
 0x14a   : > { %v967_v43 = vpop.f32.mrf.mxu0 }
 0x14b   : > { %v968_v44 = vadd.f32 %v967_v43, %v966_v41  ;;  %623 = vmatmul.mubr.f32.gmra.mxu1 %v435_v42  ;;  %v1557_v41 = vrot.slane %v540_v39, %v544_v38  ;;  %v1559_v42 = vrot.slane %v540_v39, %v548_v40 }
 0x14c   : > { %v969_v45 = vpop.f32.mrf.mxu0  ;;  %628 = vmatprep.mubr.f32.mxu1 %v1298_v32 }
 0x14d   : > { %v440_v46 = vadd.f32 %v968_v44, %v1521_v34 }
 0x14e   : > { %v970_v47 = vpop.f32.mrf.mxu0 }
 0x14f   : > { %v971_v48 = vadd.f32 %v970_v47, %v969_v45  ;;  %629 = vmatmul.mubr.f32.gmra.mxu1 %v440_v46 }
 0x150   : > { %v972_v49 = vpop.f32.mrf.mxu0  ;;  %634 = vmatprep.mubr.f32.mxu1 %v1298_v32 }
 0x151   : > { %v445_v50 = vadd.f32 %v971_v48, %v1521_v34 }
 0x152   : > { %v973_v51 = vpop.f32.mrf.mxu0 }
 0x153   : > { %v974_v52 = vadd.f32 %v973_v51, %v972_v49  ;;  %635 = vmatmul.mubr.f32.gmra.mxu1 %v445_v50 }
 0x154   : > { %v975_v53 = vpop.f32.mrf.mxu0  ;;  %640 = vmatprep.mubr.f32.mxu1 %v1298_v32 }
 0x155   : > { %v450_v54 = vadd.f32 %v974_v52, %v1521_v34 }
 0x156   : > { %v976_v55 = vpop.f32.mrf.mxu0 }
 0x157   : > { %v977_v56 = vadd.f32 %v976_v55, %v975_v53  ;;  %641 = vmatmul.mubr.f32.gmra.mxu1 %v450_v54 }
 0x158   : > { %v978_v57 = vpop.f32.mrf.mxu0  ;;  %646 = vmatprep.mubr.f32.mxu1 %v1298_v32 }
 0x159   : > { %v455_v58 = vadd.f32 %v977_v56, %v1521_v34 }
 0x15a   : > { %v979_v59 = vpop.f32.mrf.mxu0 }
 0x15b   : > { %v980_v60 = vadd.f32 %v979_v59, %v978_v57  ;;  %647 = vmatmul.mubr.f32.gmra.mxu1 %v455_v58 }
 0x15c   : > { %v981_v61 = vpop.f32.mrf.mxu0  ;;  %652 = vmatprep.mubr.f32.mxu1 %v1298_v32 }
 0x15d   : > { %v460_v62 = vadd.f32 %v980_v60, %v1521_v34 }
 0x15e   : > { %v982_v63 = vpop.f32.mrf.mxu0 }
 0x15f   : > { %v983_v0 = vadd.f32 %v982_v63, %v981_v61  ;;  %653 = vmatmul.mubr.f32.gmra.mxu1 %v460_v62 }
 0x160   : > { %v984_v1 = vpop.f32.mrf.mxu0  ;;  %658 = vmatprep.mubr.f32.mxu1 %v1298_v32 }
 0x161   : > { %v465_v2 = vadd.f32 %v983_v0, %v1521_v34 }
 0x162   : > { %v985_v3 = vpop.f32.mrf.mxu0 }
 0x163   : > { %v986_v4 = vadd.f32 %v985_v3, %v984_v1  ;;  %659 = vmatmul.mubr.f32.gmra.mxu1 %v465_v2 }
 0x164   : > { %v987_v5 = vpop.f32.mrf.mxu0  ;;  %664 = vmatprep.mubr.f32.mxu1 %v1298_v32 }
 0x165   : > { %v470_v6 = vadd.f32 %v986_v4, %v1521_v34 }
 0x166   : > { %v988_v7 = vpop.f32.mrf.mxu0 }
 0x167   : > { %v989_v8 = vadd.f32 %v988_v7, %v987_v5  ;;  %665 = vmatmul.mubr.f32.gmra.mxu1 %v470_v6 }
 0x168   : > { %v990_v9 = vpop.f32.mrf.mxu0  ;;  %670 = vmatprep.mubr.f32.mxu1 %v1298_v32 }
 0x169   : > { %v475_v10 = vadd.f32 %v989_v8, %v1521_v34 }
 0x16a   : > { %v991_v11 = vpop.f32.mrf.mxu0 }
 0x16b   : > { %v992_v12 = vadd.f32 %v991_v11, %v990_v9  ;;  %671 = vmatmul.mubr.f32.gmra.mxu1 %v475_v10 }
 0x16c   : > { %v993_v13 = vpop.f32.mrf.mxu0  ;;  %676 = vmatprep.mubr.f32.mxu1 %v1298_v32 }
 0x16d   : > { %v480_v14 = vadd.f32 %v992_v12, %v1521_v34 }
 0x16e   : > { %v994_v15 = vpop.f32.mrf.mxu0 }
 0x16f   : > { %v995_v16 = vadd.f32 %v994_v15, %v993_v13  ;;  %677 = vmatmul.mubr.f32.gmra.mxu1 %v480_v14 }
 0x170   : > { %v996_v17 = vpop.f32.mrf.mxu0  ;;  %682 = vmatprep.mubr.f32.mxu1 %v1298_v32 }
 0x171   : > { %v485_v18 = vadd.f32 %v995_v16, %v1521_v34 }
 0x172   : > { %v997_v19 = vpop.f32.mrf.mxu0 }
 0x173   : > { %v998_v20 = vadd.f32 %v997_v19, %v996_v17  ;;  %683 = vmatmul.mubr.f32.gmra.mxu1 %v485_v18 }
 0x174   : > { %v999_v21 = vpop.f32.mrf.mxu0  ;;  %688 = vmatprep.mubr.f32.mxu1 %v1298_v32 }
 0x175   : > { %v490_v22 = vadd.f32 %v998_v20, %v1521_v34 }
 0x176   : > { %v1000_v23 = vpop.f32.mrf.mxu0 }
 0x177   : > { %v1001_v24 = vadd.f32 %v1000_v23, %v999_v21  ;;  %689 = vmatmul.mubr.f32.gmra.mxu1 %v490_v22 }
 0x178   : > { %v1002_v25 = vpop.f32.mrf.mxu0  ;;  %694 = vmatprep.mubr.f32.mxu1 %v1298_v32 }
 0x179   : > { %v495_v26 = vadd.f32 %v1001_v24, %v1521_v34 }
 0x17a   : > { %v1003_v27 = vpop.f32.mrf.mxu0 }
 0x17b   : > { %v1004_v28 = vadd.f32 %v1003_v27, %v1002_v25  ;;  %695 = vmatmul.mubr.f32.gmra.mxu1 %v495_v26 }
 0x17c   : > { %v1005_v29 = vpop.f32.mrf.mxu0  ;;  %700 = vmatprep.mubr.f32.mxu1 %v1298_v32 }
 0x17d   : > { %v500_v30 = vadd.f32 %v1004_v28, %v1521_v34 }
 0x17e   : > { %v1006_v31 = vpop.f32.mrf.mxu0 }
 0x17f   : > { %v1007_v33 = vadd.f32 %v1006_v31, %v1005_v29  ;;  %701 = vmatmul.mubr.f32.gmra.mxu1 %v500_v30 }
 0x180   : > { %706 = vmatprep.mubr.f32.mxu1 %v1298_v32 }
 0x181   : > { %v505_v35 = vadd.f32 %v1007_v33, %v1521_v34 }
 0x183   : > { %707 = vmatmul.mubr.f32.gmra.mxu1 %v505_v35 }
 0x207   : > { %v618_v43 = vpop.f32.mrf.mxu1 }
 0x208   : > { %v619_v44 = vadd.f32 %v618_v43, %v1557_v41 }
 0x209   : > { %v620_v45 = vpop.f32.mrf.mxu1 }
 0x20a   : > { %1077 = vtanh.f32 %v619_v44  ;;  %v621_v32 = vadd.f32 %v620_v45, %v1559_v42 }
 0x20b   : > { %v624_v34 = vpop.f32.mrf.mxu1 }
 0x20c   : > { %1079 = vtanh.f32 %v621_v32  ;;  %v625_v46 = vadd.f32 %v624_v34, %v1557_v41 }
 0x20d   : > { %v626_v47 = vpop.f32.mrf.mxu1 }
 0x20e   : > { %1081 = vtanh.f32 %v625_v46  ;;  %v627_v48 = vadd.f32 %v626_v47, %v1559_v42 }
 0x20f   : > { %v630_v49 = vpop.f32.mrf.mxu1 }
 0x210   : > { %1083 = vtanh.f32 %v627_v48  ;;  %v631_v50 = vadd.f32 %v630_v49, %v1557_v41 }
 0x211   : > { %v632_v51 = vpop.f32.mrf.mxu1 }
 0x212   : > { %1085 = vtanh.f32 %v631_v50  ;;  %v633_v52 = vadd.f32 %v632_v51, %v1559_v42 }
 0x213   : > { %v636_v53 = vpop.f32.mrf.mxu1 }
 0x214   : > { %1087 = vtanh.f32 %v633_v52  ;;  %v637_v54 = vadd.f32 %v636_v53, %v1557_v41 }
 0x215   : > { %v638_v55 = vpop.f32.mrf.mxu1 }
 0x216   : > { %1089 = vtanh.f32 %v637_v54  ;;  %v639_v56 = vadd.f32 %v638_v55, %v1559_v42 }
 0x217   : > { %v1078_v57 = vpop.eup %1077  ;;  %v642_v58 = vpop.f32.mrf.mxu1 }
 0x218   : > { %745 = vst [vmem:[%s1571_s26] sm:$0xff] %v1078_v57  ;;  %1091 = vtanh.f32 %v639_v56  ;;  %v643_v59 = vadd.f32 %v642_v58, %v1557_v41 }
 0x219   : > { %v1080_v60 = vpop.eup %1079  ;;  %v644_v61 = vpop.f32.mrf.mxu1 }
 0x21a   : > { %746 = vst [vmem:[%s1571_s26 + $0x8] sm:$0xff] %v1080_v60  ;;  %1093 = vtanh.f32 %v643_v59  ;;  %v645_v62 = vadd.f32 %v644_v61, %v1559_v42 }
 0x21b   : > { %v1082_v63 = vpop.eup %1081  ;;  %v648_v0 = vpop.f32.mrf.mxu1 }
 0x21c   : > { %747 = vst [vmem:[%s1571_s26 + $0x10] sm:$0xff] %v1082_v63  ;;  %1095 = vtanh.f32 %v645_v62  ;;  %v649_v1 = vadd.f32 %v648_v0, %v1557_v41 }
 0x21d   : > { %v1084_v2 = vpop.eup %1083  ;;  %v650_v3 = vpop.f32.mrf.mxu1 }
 0x21e   : > { %748 = vst [vmem:[%s1571_s26 + $0x18] sm:$0xff] %v1084_v2  ;;  %1097 = vtanh.f32 %v649_v1  ;;  %v651_v4 = vadd.f32 %v650_v3, %v1559_v42 }
 0x21f   : > { %v1086_v5 = vpop.eup %1085  ;;  %v654_v6 = vpop.f32.mrf.mxu1 }
 0x220   : > { %749 = vst [vmem:[%s1571_s26 + $0x20] sm:$0xff] %v1086_v5  ;;  %1099 = vtanh.f32 %v651_v4  ;;  %v655_v7 = vadd.f32 %v654_v6, %v1557_v41 }
 0x221   : > { %v1088_v8 = vpop.eup %1087  ;;  %v656_v9 = vpop.f32.mrf.mxu1 }
 0x222   : > { %750 = vst [vmem:[%s1571_s26 + $0x28] sm:$0xff] %v1088_v8  ;;  %1101 = vtanh.f32 %v655_v7  ;;  %v657_v10 = vadd.f32 %v656_v9, %v1559_v42 }
 0x223   : > { %v1090_v11 = vpop.eup %1089  ;;  %v660_v12 = vpop.f32.mrf.mxu1 }
 0x224   : > { %751 = vst [vmem:[%s1571_s26 + $0x30] sm:$0xff] %v1090_v11  ;;  %1103 = vtanh.f32 %v657_v10  ;;  %v661_v13 = vadd.f32 %v660_v12, %v1557_v41 }
 0x225   : > { %v1092_v14 = vpop.eup %1091  ;;  %v662_v15 = vpop.f32.mrf.mxu1 }
 0x226   : > { %752 = vst [vmem:[%s1571_s26 + $0x38] sm:$0xff] %v1092_v14  ;;  %1105 = vtanh.f32 %v661_v13  ;;  %v663_v16 = vadd.f32 %v662_v15, %v1559_v42 }
 0x227   : > { %v1094_v17 = vpop.eup %1093  ;;  %v666_v18 = vpop.f32.mrf.mxu1 }
 0x228   : > { %753 = vst [vmem:[%s1571_s26 + $0x40] sm:$0xff] %v1094_v17  ;;  %1107 = vtanh.f32 %v663_v16  ;;  %v667_v19 = vadd.f32 %v666_v18, %v1557_v41 }
 0x229   : > { %v1096_v20 = vpop.eup %1095  ;;  %v668_v21 = vpop.f32.mrf.mxu1 }
 0x22a   : > { %754 = vst [vmem:[%s1571_s26 + $0x48] sm:$0xff] %v1096_v20  ;;  %1109 = vtanh.f32 %v667_v19  ;;  %v669_v22 = vadd.f32 %v668_v21, %v1559_v42 }
 0x22b   : > { %v1098_v23 = vpop.eup %1097  ;;  %v672_v24 = vpop.f32.mrf.mxu1 }
 0x22c   : > { %755 = vst [vmem:[%s1571_s26 + $0x50] sm:$0xff] %v1098_v23  ;;  %1111 = vtanh.f32 %v669_v22  ;;  %v673_v25 = vadd.f32 %v672_v24, %v1557_v41 }
 0x22d   : > { %v1100_v26 = vpop.eup %1099  ;;  %v674_v27 = vpop.f32.mrf.mxu1 }
 0x22e   : > { %756 = vst [vmem:[%s1571_s26 + $0x58] sm:$0xff] %v1100_v26  ;;  %1113 = vtanh.f32 %v673_v25  ;;  %v675_v28 = vadd.f32 %v674_v27, %v1559_v42 }
 0x22f   : > { %v1102_v29 = vpop.eup %1101  ;;  %v678_v30 = vpop.f32.mrf.mxu1 }
 0x230   : > { %757 = vst [vmem:[%s1571_s26 + $0x60] sm:$0xff] %v1102_v29  ;;  %1115 = vtanh.f32 %v675_v28  ;;  %v679_v31 = vadd.f32 %v678_v30, %v1557_v41 }
 0x231   : > { %v1104_v33 = vpop.eup %1103  ;;  %v680_v35 = vpop.f32.mrf.mxu1 }
 0x232   : > { %758 = vst [vmem:[%s1571_s26 + $0x68] sm:$0xff] %v1104_v33  ;;  %1117 = vtanh.f32 %v679_v31  ;;  %v681_v36 = vadd.f32 %v680_v35, %v1559_v42 }
 0x233   : > { %v1106_v37 = vpop.eup %1105  ;;  %v684_v38 = vpop.f32.mrf.mxu1 }
 0x234   : > { %759 = vst [vmem:[%s1571_s26 + $0x70] sm:$0xff] %v1106_v37  ;;  %1119 = vtanh.f32 %v681_v36  ;;  %v685_v39 = vadd.f32 %v684_v38, %v1557_v41 }
 0x235   : > { %v1108_v40 = vpop.eup %1107  ;;  %v686_v43 = vpop.f32.mrf.mxu1 }
 0x236   : > { %760 = vst [vmem:[%s1571_s26 + $0x78] sm:$0xff] %v1108_v40  ;;  %1121 = vtanh.f32 %v685_v39  ;;  %v687_v44 = vadd.f32 %v686_v43, %v1559_v42 }
 0x237   : > { %v1110_v45 = vpop.eup %1109  ;;  %v690_v32 = vpop.f32.mrf.mxu1 }
 0x238   : > { %761 = vst [vmem:[%s1571_s26 + $0x80] sm:$0xff] %v1110_v45  ;;  %1123 = vtanh.f32 %v687_v44  ;;  %v691_v34 = vadd.f32 %v690_v32, %v1557_v41 }
 0x239   : > { %v1112_v46 = vpop.eup %1111  ;;  %v692_v47 = vpop.f32.mrf.mxu1 }
 0x23a   : > { %762 = vst [vmem:[%s1571_s26 + $0x88] sm:$0xff] %v1112_v46  ;;  %1125 = vtanh.f32 %v691_v34  ;;  %v693_v48 = vadd.f32 %v692_v47, %v1559_v42 }
 0x23b   : > { %v1114_v49 = vpop.eup %1113  ;;  %v696_v50 = vpop.f32.mrf.mxu1 }
 0x23c   : > { %763 = vst [vmem:[%s1571_s26 + $0x90] sm:$0xff] %v1114_v49  ;;  %1127 = vtanh.f32 %v693_v48  ;;  %v697_v51 = vadd.f32 %v696_v50, %v1557_v41 }
 0x23d   : > { %v1116_v52 = vpop.eup %1115  ;;  %v698_v53 = vpop.f32.mrf.mxu1 }
 0x23e   : > { %764 = vst [vmem:[%s1571_s26 + $0x98] sm:$0xff] %v1116_v52  ;;  %1129 = vtanh.f32 %v697_v51  ;;  %v699_v54 = vadd.f32 %v698_v53, %v1559_v42 }
 0x23f   : > { %v1118_v55 = vpop.eup %1117  ;;  %v702_v56 = vpop.f32.mrf.mxu1 }
 0x240   : > { %765 = vst [vmem:[%s1571_s26 + $0xa0] sm:$0xff] %v1118_v55  ;;  %1131 = vtanh.f32 %v699_v54  ;;  %v703_v57 = vadd.f32 %v702_v56, %v1557_v41 }
 0x241   : > { %v1120_v58 = vpop.eup %1119  ;;  %v704_v59 = vpop.f32.mrf.mxu1 }
 0x242   : > { %766 = vst [vmem:[%s1571_s26 + $0xa8] sm:$0xff] %v1120_v58  ;;  %1133 = vtanh.f32 %v703_v57  ;;  %v705_v60 = vadd.f32 %v704_v59, %v1559_v42 }
 0x243   : > { %v1122_v61 = vpop.eup %1121  ;;  %v708_v62 = vpop.f32.mrf.mxu1 }
 0x244   : > { %767 = vst [vmem:[%s1571_s26 + $0xb0] sm:$0xff] %v1122_v61  ;;  %1135 = vtanh.f32 %v705_v60  ;;  %v709_v63 = vadd.f32 %v708_v62, %v1557_v41 }
 0x245   : > { %v1124_v0 = vpop.eup %1123  ;;  %v710_v1 = vpop.f32.mrf.mxu1 }
 0x246   : > { %768 = vst [vmem:[%s1571_s26 + $0xb8] sm:$0xff] %v1124_v0  ;;  %1137 = vtanh.f32 %v709_v63  ;;  %v711_v2 = vadd.f32 %v710_v1, %v1559_v42 }
 0x247   : > { %v1126_v3 = vpop.eup %1125 }
 0x248   : > { %769 = vst [vmem:[%s1571_s26 + $0xc0] sm:$0xff] %v1126_v3  ;;  %1139 = vtanh.f32 %v711_v2 }
 0x249   : > { %v1128_v4 = vpop.eup %1127 }
 0x24a   : > { %770 = vst [vmem:[%s1571_s26 + $0xc8] sm:$0xff] %v1128_v4 }
 0x24b   : > { %v1130_v5 = vpop.eup %1129 }
 0x24c   : > { %771 = vst [vmem:[%s1571_s26 + $0xd0] sm:$0xff] %v1130_v5 }
 0x24d   : > { %v1132_v6 = vpop.eup %1131 }
 0x24e   : > { %772 = vst [vmem:[%s1571_s26 + $0xd8] sm:$0xff] %v1132_v6 }
 0x24f   : > { %v1134_v41 = vpop.eup %1133 }
 0x250   : > { %773 = vst [vmem:[%s1571_s26 + $0xe0] sm:$0xff] %v1134_v41 }
 0x251   : > { %v1136_v7 = vpop.eup %1135 }
 0x252   : > { %774 = vst [vmem:[%s1571_s26 + $0xe8] sm:$0xff] %v1136_v7  ;;  %784 = sbr.rel (!%p1707_p0) target bundleno = 626 (0x272), region = 56 }
 0x253   : > { %v1138_v8 = vpop.eup %1137 }
 0x254   : > { %775 = vst [vmem:[%s1571_s26 + $0xf0] sm:$0xff] %v1138_v8 }
 0x255   : > { %v1140_v9 = vpop.eup %1139 }
 0x256   : > { %776 = vst [vmem:[%s1571_s26 + $0xf8] sm:$0xff] %v1140_v9 }
 0x257   : > { %s1716_s28 = smov (!%p787_p10, %s786_s28), 16 }
 0x258   : > { %s1633_s23 = sshll.u32 %s1716_s28, 8 }
 0x259   : > { %s792_s25 = ssub.s32 4096, %s1633_s23 }
 0x25a   : > { %793 = vsyncadd %s778_s8, %s792_s25  ;;  %p915_p1 = scmp.ne.s32.totalorder %s1633_s23, 0  ;;  %s927_s30 = sshll.u32 %s1353_s22, 12 }
 0x25b   : > { %s1643_s14 = scalar_lea.hbm %s1695_s5, %s927_s30  ;;  %s799_s15 = sshll.u32 %s1571_s26, 4  ;;  %s1646_s15 = int_to_ptr.vmem [resolvable:$true] %s799_s15 }
 0x25c   : > { %s1219_s10 = scalar_lea.vmem %s1646_s15, %s1633_s23  ;;  %s1299_s29 = smov [#allocation8]  }
 0x25d   : > { %p1220_p3 = scmp.ne.s32.totalorder %s1646_s15, %s1219_s10  ;;  %s1223_s7 = sshll.u32 %s1299_s29, 4  ;;  %s1224_s7 = int_to_ptr.vmem [resolvable:$false] %s1223_s7 }
 0x25e   : > { %s1225_s22 = scalar_lea.vmem %s1224_s7, 8192  ;;  %p1226_p12 = scmp.lt.s32.totalorder %s1646_s15, %s1224_s7 }
 0x25f   : > { %p1221_p7 = pnand %p1220_p3, %p915_p1  ;;  %p1227_p8 = scmp.lt.s32.totalorder %s1225_s22, %s1219_s10 }
 0x261   : > { %p1222_p9 = pneg %p1221_p7  ;;  %p1228_p4 = por %p1227_p8, %p1226_p12 }
 0x263   : > { %p1229_p6 = pnand %p1228_p4, %p1222_p9 }
 0x265   : > { %1232 = shalt.err (!%p1229_p6)
}
 0x266   : > { %s1233_s16 = scalar_lea.hbm %s1643_s14, %s1633_s23  ;;  %s1237_s12 = scalar_lea.hbm %s1695_s5, 9728 }
 0x267   : > { %p1234_p11 = scmp.ne.s32.totalorder %s1643_s14, %s1233_s16  ;;  %p1238_p13 = scmp.lt.s32.totalorder %s1643_s14, %s1695_s5 }
 0x268   : > { %p1239_p0 = scmp.lt.s32.totalorder %s1237_s12, %s1233_s16 }
 0x269   : > { %p1235_p2 = pnand %p1234_p11, %p915_p1 }
 0x26a   : > { %p1240_p10 = por %p1239_p0, %p1238_p13 }
 0x26b   : > { %p1236_p5 = pneg %p1235_p2 }
 0x26d   : > { %p1241_p3 = pnand %p1240_p10, %p1236_p5 }
 0x26f   : > { %1244 = shalt.err (!%p1241_p3)
}
 0x270   : > { %s1300_s30 = smov 256   ;;  %s1301_s11 = smov 16  }
 0x271   : > { %805 = dma.vmem_to_hbm [thread:$0]  (%p915_p1), %s1646_s15, %s1633_s23, %s1643_s14, %s778_s8, %s1300_s30, %s1300_s30, %s1301_s11  }
 0x272 PF: > { %p1033_p7 = scmp.ge.s32.totalorder %s1287_s21, 2  ;;  %s814_s9 = sand.u32 1, %s1275_s18  }
 0x273   : > { %p1708_p9 = scmp.ne.s32.totalorder %s1701_s6, 0  ;;  %s815_s10 = scalar_lea.sflag [#allocation4], %s814_s9 }
 0x275   : > { %p1026_p12 = pnand %p1033_p7, %p1708_p9 }
 0x277   : > { %p1027_p8 = pneg %p1026_p12 }
 0x279   : > { %1270 = dma.done.wait (%p1027_p8), %s815_s10, 4096  }
 0x27a   : > { %1272 = vsyncadd (%p1027_p8), %s815_s10, 4294963200  ;;  %p19_p4 = scmp.ge.s32.totalorder %s1357_s24, 5   ;;  %s1709_s18 = smov %s1279_s19 }
 0x27b   : > { %s1710_s19 = smov %s1283_s20  ;;  %s1711_s20 = smov %s1369_s27 }
 0x27c   : > { %s1712_s21 = smov %s1357_s24  ;;  %21 = sbr.rel (!%p19_p4) target bundleno = 6 (0x6), region = 93 }
 0x281   :  { %820 = vsyncpa [#allocation3], 1 }
 0x282   :  { %822 = vsyncpa [#allocation3 + $0x1], 1 }
 0x283   :  { %823 = vsyncpa [#allocation6], 1 }
 0x284   :  { %824 = vsyncpa [#allocation4], 1 }
 0x285   :  { %826 = vsyncpa [#allocation4 + $0x1], 1 }

// kernel: tpu_custom_call.1
= control target key start
LH: loop header
LB: loop body
LE: loop exit
PB: predicated region body
PF: predicated region fallthrough
CT: control target
= control target key end

     0   :  { %10 = vsyncpa [#allocation3], 0  ;;  %s1690_s0 = inlined_call_operand.hbm [shape: f32[300,256], index: 0, kind: input, shape index: {}]   ;;  %s1691_s1 = inlined_call_operand.hbm [shape: f32[256,128], index: 1, kind: input, shape index: {}]   ;;  %s1692_s2 = inlined_call_operand.vmem [shape: f32[1,128], index: 2, kind: input, shape index: {}]   ;;  %s1693_s3 = inlined_call_operand.hbm [shape: f32[128,256], index: 3, kind: input, shape index: {}]   ;;  %s1694_s4 = inlined_call_operand.vmem [shape: f32[1,256], index: 4, kind: input, shape index: {}]   ;;  %s1695_s5 = inlined_call_operand.hbm [shape: f32[300,256], index: 5, kind: output, shape index: {}]  }
   0x1   :  { %12 = vsyncpa [#allocation3 + $0x1], 0 }
   0x2   :  { %13 = vsyncpa [#allocation6], 0 }
   0x3   :  { %14 = vsyncpa [#allocation4], 0 }
   0x4   :  { %16 = vsyncpa [#allocation4 + $0x1], 0  ;;  %s1332_s18 = smov 0   ;;  %s1334_s19 = smov 0  }
   0x5   :  { %s1336_s20 = smov 0   ;;  %s1338_s21 = smov 0  }
   0x6 LB: > { %s1353_s22 = sadd.s32 4294967295, %s1287_s21   ;;  %s891_s23 = sadd.s32 4294967294, %s1287_s21   ;;  %s1287_s21 = sphi %s1338_s21, %s1712_s21   ;;  %s1283_s20 = sphi %s1336_s20, %s1711_s20   ;;  %s1279_s19 = sphi %s1334_s19, %s1710_s19   ;;  %s1275_s18 = sphi %s1332_s18, %s1709_s18  }
   0x7   : > { %s1357_s24 = sadd.s32 1, %s1287_s21   ;;  %s29_s25 = sadd.s32 1, %s1283_s20 }
   0x8   : > { %s26_s26 = ssub.s32 %s1287_s21, %s1357_s24  ;;  %p36_p0 = scmp.ne.s32.totalorder %s1283_s20, %s1279_s19 }
   0x9   : > { %p27_p1 = scmp.eq.s32.totalorder %s26_s26, 0  ;;  %p37_p2 = scmp.eq.s32.totalorder %s1287_s21, 0 }
   0xa   : > { %p42_p3 = scmp.ne.s32.totalorder %s1279_s19, %s1275_s18  ;;  %p1696_p4 = scmp.eq.s32.totalorder %s1353_s22, 0 }
   0xb   : > { %s1369_s27 = scalar_select %p27_p1, %s1283_s20, %s29_s25  }
   0xc   : > { %p1371_p5 = por %p37_p2, %p36_p0  ;;  %p1377_p6 = por %p1696_p4, %p42_p3 }
   0xd   : > { %p150_p7 = scmp.eq.s32.totalorder %s1353_s22, 2  ;;  %p156_p8 = scmp.eq.s32.totalorder %s891_s23, 2 }
   0xe   : > { %s1699_s29 = scalar_select %p1377_p6, 1, 0 }
   0xf   : > { %p892_p9 = scmp.ge.s32.totalorder %s1287_s21, 1  ;;  %p163_p10 = scmp.lt.s32.totalorder %s1287_s21, 4 }
  0x10   : > { %p1384_p11 = por %p150_p7, %p36_p0  ;;  %p1388_p12 = por %p156_p8, %p42_p3 }
  0x11   : > { %p1392_p13 = pnand %p892_p9, %p163_p10  ;;  %s1289_s8 = smov [#allocation5]  }
  0x12   : > { %s1700_s30 = scalar_select %p1384_p11, 1, 0 }
  0x13   : > { %s1701_s6 = scalar_select %p1388_p12, 1, 0 }
  0x14   : > { %p1018_p1 = pneg %p1392_p13  ;;  %s175_s9 = sshll.u32 %s1289_s8, 4  ;;  %s176_s9 = int_to_ptr.vmem [resolvable:$true] %s175_s9 }
  0x15   : > { %s1290_s11 = smov [#allocation7]   ;;  %s1152_s13 = scalar_lea.vmem %s176_s9, 4096 }
  0x16   : > { %p1400_p2 = pnand %p1018_p1, %p1696_p4  ;;  %s191_s12 = sshll.u32 %s1290_s11, 4  ;;  %s192_s12 = int_to_ptr.vmem [resolvable:$true] %s191_s12 }
  0x17   : > { %p1153_p3 = scmp.ne.s32.totalorder %s176_s9, %s1152_s13  ;;  %p1160_p9 = scmp.lt.s32.totalorder %s176_s9, %s176_s9 }
  0x18   : > { %p1143_p0 = pneg %p1400_p2  ;;  %p1161_p10 = scmp.lt.s32.totalorder %s1152_s13, %s1152_s13 }
  0x1a   : > { %p1155_p7 = pnand %p1153_p3, %p1143_p0  ;;  %p1162_p12 = por %p1161_p10, %p1160_p9 }
  0x1c   : > { %p1156_p8 = pneg %p1155_p7 }
  0x1e   : > { %p1163_p1 = pnand %p1162_p12, %p1156_p8 }
  0x20   : > { %1166 = shalt.err (!%p1163_p1)
}
  0x21   : > { %s1291_s14 = smov 128   ;;  %s1292_s15 = smov 8  }
  0x22   : > { %1021 = dma.hbm_to_vmem [thread:$0]  (!%p1400_p2), %s1691_s1, 4096, %s176_s9, [#allocation6], %s1291_s14, %s1291_s14, %s1292_s15  }
  0x23   : > { %s1178_s23 = scalar_lea.vmem %s192_s12, 4096  ;;  %p1186_p11 = scmp.lt.s32.totalorder %s192_s12, %s192_s12 }
  0x24   : > { %p1179_p4 = scmp.ne.s32.totalorder %s192_s12, %s1178_s23  ;;  %p1187_p6 = scmp.lt.s32.totalorder %s1178_s23, %s1178_s23 }
  0x26   : > { %p1181_p3 = pnand %p1179_p4, %p1143_p0  ;;  %p1188_p9 = por %p1187_p6, %p1186_p11 }
  0x28   : > { %p1182_p7 = pneg %p1181_p3 }
  0x2a   : > { %p1189_p12 = pnand %p1188_p9, %p1182_p7 }
  0x2c   : > { %1192 = shalt.err (!%p1189_p12)
}
  0x2d   : > { %s1293_s25 = smov 256   ;;  %s1294_s26 = smov 16  }
  0x2e   : > { %1024 = dma.hbm_to_vmem [thread:$0]  (!%p1400_p2), %s1693_s3, 4096, %s192_s12, [#allocation6], %s1293_s25, %s1293_s25, %s1294_s26  }
  0x2f   : > { %p895_p8 = scmp.ge.s32.totalorder %s1287_s21, 3 }
  0x31   : > { %204 = sbr.rel (%p895_p8) target bundleno = 86 (0x56), region = 32 }
  0x36   : > { %207 = sbr.rel (!%p1371_p5) target bundleno = 86 (0x56), region = 36  ;;  %s208_s9 = sand.u32 (%p1371_p5), 1, %s1283_s20  }
  0x37   : > { %s897_s13 = sshll.u32 (%p1371_p5), %s1287_s21, 4  ;;  %s896_s14 = sshll.u32 (%p1371_p5), %s208_s9, 8 }
  0x38   : > { %s214_s15 = ssub.s32 (%p1371_p5), 38, %s897_s13  ;;  %s1430_s17 = scalar_lea.sflag (%p1371_p5), [#allocation3], %s208_s9 }
  0x39   : > { %p215_p4 = scmp.lt.s32.totalorder (%p1371_p5), %s214_s15, 16  ;;  %s212_s12 = scalar_lea.vmem (%p1371_p5), [#allocation2], %s896_s14 }
  0x3b   : > { %s1714_s15 = smov (!%p215_p4, %s214_s15), 16 }
  0x3c   : > { %s1427_s16 = sshll.u32 %s1714_s15, 8 }
  0x3d   : > { %s220_s10 = ssub.s32 4096, %s1427_s16 }
  0x3e   : > { %221 = vsyncadd %s1430_s17, %s220_s10  ;;  %p900_p5 = scmp.ne.s32.totalorder %s1427_s16, 0  ;;  %s924_s28 = sshll.u32 %s1287_s21, 12 }
  0x3f   : > { %s1438_s26 = scalar_lea.hbm %s1690_s0, %s924_s28  ;;  %s227_s8 = sshll.u32 %s212_s12, 4  ;;  %s1440_s8 = int_to_ptr.vmem [resolvable:$true] %s227_s8 }
  0x40   : > { %s1193_s11 = scalar_lea.hbm %s1438_s26, %s1427_s16  ;;  %s1197_s14 = scalar_lea.hbm %s1690_s0, 9728 }
  0x41   : > { %p1194_p6 = scmp.ne.s32.totalorder %s1438_s26, %s1193_s11  ;;  %p1198_p0 = scmp.lt.s32.totalorder %s1438_s26, %s1690_s0 }
  0x42   : > { %p1199_p10 = scmp.lt.s32.totalorder %s1197_s14, %s1193_s11 }
  0x43   : > { %p1195_p11 = pnand %p1194_p6, %p900_p5 }
  0x44   : > { %p1200_p1 = por %p1199_p10, %p1198_p0 }
  0x45   : > { %p1196_p2 = pneg %p1195_p11 }
  0x47   : > { %p1201_p3 = pnand %p1200_p1, %p1196_p2 }
  0x49   : > { %1204 = shalt.err (!%p1201_p3)
}
  0x4a   : > { %s1205_s12 = scalar_lea.vmem %s1440_s8, %s1427_s16  ;;  %s1295_s28 = smov [#allocation2]  }
  0x4b   : > { %p1206_p7 = scmp.ne.s32.totalorder %s1440_s8, %s1205_s12  ;;  %s1209_s23 = sshll.u32 %s1295_s28, 4  ;;  %s1210_s23 = int_to_ptr.vmem [resolvable:$false] %s1209_s23 }
  0x4c   : > { %s1211_s25 = scalar_lea.vmem %s1210_s23, 8192  ;;  %p1212_p8 = scmp.lt.s32.totalorder %s1440_s8, %s1210_s23 }
  0x4d   : > { %p1207_p9 = pnand %p1206_p7, %p900_p5  ;;  %p1213_p4 = scmp.lt.s32.totalorder %s1211_s25, %s1205_s12 }
  0x4f   : > { %p1208_p12 = pneg %p1207_p9  ;;  %p1214_p6 = por %p1213_p4, %p1212_p8 }
  0x51   : > { %p1215_p11 = pnand %p1214_p6, %p1208_p12 }
  0x53   : > { %1218 = shalt.err (!%p1215_p11)
}
  0x54   : > { %s1296_s11 = smov 256   ;;  %s1297_s9 = smov 16  }
  0x55   : > { %233 = dma.hbm_to_vmem [thread:$0]  (%p900_p5), %s1438_s26, %s1427_s16, %s1440_s8, %s1430_s17, %s1296_s11, %s1296_s11, %s1297_s9  }
  0x56 PF: > { %239 = sbr.rel (%p1392_p13) target bundleno = 626 (0x272), region = 40  ;;  %s1469_s13 = sand.u32 (!%p1392_p13), 1, %s1279_s19  }
  0x57   : > { %s906_s14 = sshll.u32 (!%p1392_p13), %s1469_s13, 8  ;;  %s242_s15 = scalar_lea.sflag (!%p1392_p13), [#allocation3], %s1469_s13 }
  0x58   : > { %s1475_s10 = scalar_lea.vmem (!%p1392_p13), [#allocation2], %s906_s14  ;;  %p1704_p2 = scmp.ne.s32.totalorder (!%p1392_p13), %s1699_s29, 0 }
  0x5b   : > { %1262 = dma.done.wait (%p1704_p2), %s242_s15, 4096  }
  0x5c   : > { %1264 = vsyncadd (%p1704_p2), %s242_s15, 4294963200  ;;  %p1705_p5 = scmp.eq.s32.totalorder %s1353_s22, 0 }
  0x5e   : > { %1266 = dma.done.wait (%p1705_p5), [#allocation6], 8192   ;;  %p1706_p13 = pmov %p1705_p5 }
  0x5f   : > { %v355_v0 = vld [vmem:[#allocation5 + $0xf8] sm:$0xff]  ;;  %v354_v2 = vld [vmem:[#allocation5 + $0xf0] sm:$0xff]  ;;  %v353_v4 = vld [vmem:[#allocation5 + $0xe8] sm:$0xff]  ;;  %s1571_s26 = scalar_lea.vmem [#allocation8], %s906_s14  ;;  %s778_s8 = scalar_lea.sflag [#allocation4], %s1469_s13 }
  0x60   : > { %1268 = vsyncadd (%p1706_p13), [#allocation6], 4294959104  ;;  %v339_v1 = vld [vmem:[#allocation5 + $0x78] sm:$0xff]  ;;  %928 = vmatprep.subr.mxu0 %v355_v0  ;;  %v338_v3 = vld [vmem:[#allocation5 + $0x70] sm:$0xff]  ;;  %p1707_p0 = scmp.ne.s32.totalorder %s1700_s30, 0 }
  0x61   : > { %929 = vmatpush3.msra.mxu0 %v339_v1  ;;  %v337_v5 = vld [vmem:[#allocation5 + $0x68] sm:$0xff]  ;;  %v352_v6 = vld [vmem:[#allocation5 + $0xe0] sm:$0xff]  ;;  %v351_v8 = vld [vmem:[#allocation5 + $0xd8] sm:$0xff]  ;;  %s912_s12 = sshll.u32 (%p1707_p0), %s1353_s22, 4 }
  0x62   : > { %930 = vmatprep.subr.mxu0 %v354_v2  ;;  %v336_v7 = vld [vmem:[#allocation5 + $0x60] sm:$0xff]  ;;  %v335_v9 = vld [vmem:[#allocation5 + $0x58] sm:$0xff]  ;;  %v350_v10 = vld [vmem:[#allocation5 + $0xd0] sm:$0xff]  ;;  %s786_s28 = ssub.s32 (%p1707_p0), 38, %s912_s12 }
  0x63   : > { %931 = vmatpush3.msra.mxu0 %v338_v3  ;;  %v334_v11 = vld [vmem:[#allocation5 + $0x50] sm:$0xff]  ;;  %v349_v12 = vld [vmem:[#allocation5 + $0xc8] sm:$0xff]  ;;  %v348_v15 = vld [vmem:[#allocation5 + $0xc0] sm:$0xff]  ;;  %p787_p10 = scmp.lt.s32.totalorder (%p1707_p0), %s786_s28, 16 }
  0x64   : > { %932 = vmatprep.subr.mxu0 %v353_v4  ;;  %v293_v13 = vld [vmem:[%s1475_s10 + $0x8] sm:$0xff]  ;;  %v332_v16 = vld [vmem:[#allocation5 + $0x40] sm:$0xff]  ;;  %v347_v17 = vld [vmem:[#allocation5 + $0xb8] sm:$0xff] }
  0x65   : > { %933 = vmatpush3.msra.mxu0 %v337_v5  ;;  %v333_v14 = vld [vmem:[#allocation5 + $0x48] sm:$0xff]  ;;  %427 = vmatprep.mubr.f32.mxu0 %v293_v13  ;;  %v331_v18 = vld [vmem:[#allocation5 + $0x38] sm:$0xff]  ;;  %v346_v19 = vld [vmem:[#allocation5 + $0xb0] sm:$0xff] }
  0x66   : > { %934 = vmatprep.subr.mxu0 %v352_v6  ;;  %v330_v20 = vld [vmem:[#allocation5 + $0x30] sm:$0xff]  ;;  %v345_v21 = vld [vmem:[#allocation5 + $0xa8] sm:$0xff]  ;;  %v344_v23 = vld [vmem:[#allocation5 + $0xa0] sm:$0xff] }
  0x67   : > { %935 = vmatpush3.msra.mxu0 %v336_v7  ;;  %v329_v22 = vld [vmem:[#allocation5 + $0x28] sm:$0xff]  ;;  %v328_v24 = vld [vmem:[#allocation5 + $0x20] sm:$0xff]  ;;  %v539_v25 = vld [vmem:[#allocation7 + $0xf8] sm:$0xff] }
  0x68   : > { %936 = vmatprep.subr.mxu0 %v351_v8  ;;  %v538_v26 = vld [vmem:[#allocation7 + $0xf0] sm:$0xff]  ;;  %v343_v27 = vld [vmem:[#allocation5 + $0x98] sm:$0xff]  ;;  %552 = vmatprep.subr.mxu1 %v539_v25  ;;  %v537_v28 = vld [vmem:[#allocation7 + $0xe8] sm:$0xff] }
  0x69   : > { %937 = vmatpush3.msra.mxu0 %v335_v9  ;;  %v536_v29 = vld [vmem:[#allocation7 + $0xe0] sm:$0xff]  ;;  %v327_v30 = vld [vmem:[#allocation5 + $0x18] sm:$0xff]  ;;  %553 = vmatpush1.msra.mxu1 %v538_v26  ;;  %v342_v32 = vld [vmem:[#allocation5 + $0x90] sm:$0xff] }
  0x6a   : > { %938 = vmatprep.subr.mxu0 %v350_v10  ;;  %v535_v31 = vld [vmem:[#allocation7 + $0xd8] sm:$0xff]  ;;  %554 = vmatprep.subr.mxu1 %v537_v28  ;;  %v534_v33 = vld [vmem:[#allocation7 + $0xd0] sm:$0xff]  ;;  %v533_v35 = vld [vmem:[#allocation7 + $0xc8] sm:$0xff] }
  0x6b   : > { %939 = vmatpush3.msra.mxu0 %v334_v11  ;;  %v326_v34 = vld [vmem:[#allocation5 + $0x10] sm:$0xff]  ;;  %555 = vmatpush1.msra.mxu1 %v536_v29  ;;  %v341_v36 = vld [vmem:[#allocation5 + $0x88] sm:$0xff]  ;;  %v532_v37 = vld [vmem:[#allocation7 + $0xc0] sm:$0xff] }
  0x6c   : > { %940 = vmatprep.subr.mxu0 %v349_v12  ;;  %556 = vmatprep.subr.mxu1 %v535_v31  ;;  %v325_v38 = vld [vmem:[#allocation5 + $0x8] sm:$0xff]  ;;  %v531_v39 = vld [vmem:[#allocation7 + $0xb8] sm:$0xff]  ;;  %v340_v40 = vld [vmem:[#allocation5 + $0x80] sm:$0xff] }
  0x6d   : > { %941 = vmatpush3.msra.mxu0 %v333_v14  ;;  %557 = vmatpush1.msra.mxu1 %v534_v33  ;;  %v530_v41 = vld [vmem:[#allocation7 + $0xb0] sm:$0xff]  ;;  %v324_v42 = vld [vmem:[#allocation5] sm:$0xff]  ;;  %v529_v43 = vld [vmem:[#allocation7 + $0xa8] sm:$0xff] }
  0x6e   : > { %942 = vmatprep.subr.mxu0 %v348_v15  ;;  %558 = vmatprep.subr.mxu1 %v533_v35  ;;  %v292_v44 = vld [vmem:[%s1475_s10] sm:$0xff]  ;;  %v295_v46 = vld [vmem:[%s1475_s10 + $0x18] sm:$0xff]  ;;  %v526_v48 = vld [vmem:[#allocation7 + $0x90] sm:$0xff] }
  0x6f   : > { %943 = vmatpush3.msra.mxu0 %v332_v16  ;;  %559 = vmatpush1.msra.mxu1 %v532_v37  ;;  %v528_v45 = vld [vmem:[#allocation7 + $0xa0] sm:$0xff]  ;;  %v527_v47 = vld [vmem:[#allocation7 + $0x98] sm:$0xff]  ;;  %v525_v49 = vld [vmem:[#allocation7 + $0x88] sm:$0xff] }
  0x70   : > { %944 = vmatprep.subr.mxu0 %v347_v17  ;;  %560 = vmatprep.subr.mxu1 %v531_v39  ;;  %v294_v50 = vld [vmem:[%s1475_s10 + $0x10] sm:$0xff]  ;;  %v524_v51 = vld [vmem:[#allocation7 + $0x80] sm:$0xff]  ;;  %v297_v52 = vld [vmem:[%s1475_s10 + $0x28] sm:$0xff] }
  0x71   : > { %945 = vmatpush3.msra.mxu0 %v331_v18  ;;  %561 = vmatpush1.msra.mxu1 %v530_v41  ;;  %v523_v53 = vld [vmem:[#allocation7 + $0x78] sm:$0xff]  ;;  %v522_v54 = vld [vmem:[#allocation7 + $0x70] sm:$0xff]  ;;  %v521_v55 = vld [vmem:[#allocation7 + $0x68] sm:$0xff] }
  0x72   : > { %946 = vmatprep.subr.mxu0 %v346_v19  ;;  %562 = vmatprep.subr.mxu1 %v529_v43  ;;  %v296_v56 = vld [vmem:[%s1475_s10 + $0x20] sm:$0xff]  ;;  %v299_v58 = vld [vmem:[%s1475_s10 + $0x38] sm:$0xff]  ;;  %v518_v60 = vld [vmem:[#allocation7 + $0x50] sm:$0xff] }
  0x73   : > { %947 = vmatpush3.msra.mxu0 %v330_v20  ;;  %563 = vmatpush1.msra.mxu1 %v528_v45  ;;  %v520_v57 = vld [vmem:[#allocation7 + $0x60] sm:$0xff]  ;;  %v519_v59 = vld [vmem:[#allocation7 + $0x58] sm:$0xff]  ;;  %v517_v61 = vld [vmem:[#allocation7 + $0x48] sm:$0xff] }
  0x74   : > { %948 = vmatprep.subr.mxu0 %v345_v21  ;;  %564 = vmatprep.subr.mxu1 %v527_v47  ;;  %v298_v62 = vld [vmem:[%s1475_s10 + $0x30] sm:$0xff]  ;;  %v516_v63 = vld [vmem:[#allocation7 + $0x40] sm:$0xff]  ;;  %v301_v0 = vld [vmem:[%s1475_s10 + $0x48] sm:$0xff] }
  0x75   : > { %949 = vmatpush3.msra.mxu0 %v329_v22  ;;  %565 = vmatpush1.msra.mxu1 %v526_v48  ;;  %v515_v1 = vld [vmem:[#allocation7 + $0x38] sm:$0xff]  ;;  %v300_v2 = vld [vmem:[%s1475_s10 + $0x40] sm:$0xff]  ;;  %v302_v4 = vld [vmem:[%s1475_s10 + $0x50] sm:$0xff] }
  0x76   : > { %950 = vmatprep.subr.mxu0 %v344_v23  ;;  %566 = vmatprep.subr.mxu1 %v525_v49  ;;  %v303_v3 = vld [vmem:[%s1475_s10 + $0x58] sm:$0xff]  ;;  %v305_v5 = vld [vmem:[%s1475_s10 + $0x68] sm:$0xff]  ;;  %v304_v6 = vld [vmem:[%s1475_s10 + $0x60] sm:$0xff] }
  0x77   : > { %951 = vmatpush3.msra.mxu0 %v328_v24  ;;  %567 = vmatpush1.msra.mxu1 %v524_v51  ;;  %v307_v7 = vld [vmem:[%s1475_s10 + $0x78] sm:$0xff]  ;;  %v306_v8 = vld [vmem:[%s1475_s10 + $0x70] sm:$0xff]  ;;  %v309_v9 = vld [vmem:[%s1475_s10 + $0x88] sm:$0xff] }
  0x78   : > { %952 = vmatprep.subr.mxu0 %v343_v27  ;;  %568 = vmatprep.subr.mxu1 %v523_v53  ;;  %v308_v10 = vld [vmem:[%s1475_s10 + $0x80] sm:$0xff]  ;;  %v311_v11 = vld [vmem:[%s1475_s10 + $0x98] sm:$0xff]  ;;  %v310_v12 = vld [vmem:[%s1475_s10 + $0x90] sm:$0xff] }
  0x79   : > { %953 = vmatpush3.msra.mxu0 %v327_v30  ;;  %569 = vmatpush1.msra.mxu1 %v522_v54  ;;  %v313_v13 = vld [vmem:[%s1475_s10 + $0xa8] sm:$0xff]  ;;  %v312_v14 = vld [vmem:[%s1475_s10 + $0xa0] sm:$0xff]  ;;  %v315_v15 = vld [vmem:[%s1475_s10 + $0xb8] sm:$0xff] }
  0x7a   : > { %954 = vmatprep.subr.mxu0 %v342_v32  ;;  %570 = vmatprep.subr.mxu1 %v521_v55  ;;  %v314_v16 = vld [vmem:[%s1475_s10 + $0xb0] sm:$0xff]  ;;  %v317_v17 = vld [vmem:[%s1475_s10 + $0xc8] sm:$0xff]  ;;  %v316_v18 = vld [vmem:[%s1475_s10 + $0xc0] sm:$0xff]  ;;  %v1298_v32 = vmov 0.0  }
  0x7b   : > { %955 = vmatpush3.msra.mxu0 %v326_v34  ;;  %571 = vmatpush1.msra.mxu1 %v520_v57  ;;  %v319_v19 = vld [vmem:[%s1475_s10 + $0xd8] sm:$0xff]  ;;  %v318_v20 = vld [vmem:[%s1475_s10 + $0xd0] sm:$0xff]  ;;  %v321_v21 = vld [vmem:[%s1475_s10 + $0xe8] sm:$0xff] }
  0x7c   : > { %956 = vmatprep.subr.mxu0 %v341_v36  ;;  %572 = vmatprep.subr.mxu1 %v519_v59  ;;  %v320_v22 = vld [vmem:[%s1475_s10 + $0xe0] sm:$0xff]  ;;  %v323_v23 = vld [vmem:[%s1475_s10 + $0xf8] sm:$0xff]  ;;  %v322_v24 = vld [vmem:[%s1475_s10 + $0xf0] sm:$0xff] }
  0x7d   : > { %957 = vmatpush3.msra.mxu0 %v325_v38  ;;  %573 = vmatpush1.msra.mxu1 %v518_v60  ;;  %v514_v25 = vld [vmem:[#allocation7 + $0x30] sm:$0xff]  ;;  %v513_v26 = vld [vmem:[#allocation7 + $0x28] sm:$0xff]  ;;  %v512_v27 = vld [vmem:[#allocation7 + $0x20] sm:$0xff] }
  0x7e   : > { %958 = vmatprep.subr.mxu0 %v340_v40  ;;  %574 = vmatprep.subr.mxu1 %v517_v61  ;;  %v511_v28 = vld [vmem:[#allocation7 + $0x18] sm:$0xff]  ;;  %v510_v29 = vld [vmem:[#allocation7 + $0x10] sm:$0xff]  ;;  %v509_v30 = vld [vmem:[#allocation7 + $0x8] sm:$0xff] }
  0x7f   : > { %959 = vmatpush3.msra.mxu0 %v324_v42  ;;  %575 = vmatpush1.msra.mxu1 %v516_v63  ;;  %v508_v31 = vld [vmem:[#allocation7] sm:$0xff] }
  0x80   : > { %428 = vmatmul.mubr.f32.vlgmr.msra.gmra.mxu0 %v292_v44  ;;  %576 = vmatprep.subr.mxu1 %v515_v1  ;;  %v1521_v34 = vld [vmem:[%s1692_s2] ss:$0 sm:$0xff] }
  0x81   : > { %432 = vmatprep.mubr.f32.mxu0 %v295_v46  ;;  %577 = vmatpush1.msra.mxu1 %v514_v25 }
  0x82   : > { %578 = vmatprep.subr.mxu1 %v513_v26  ;;  %616 = vmatprep.mubr.f32.mxu1 %v1298_v32 }
  0x83   : > { %579 = vmatpush1.msra.mxu1 %v512_v27 }
  0x84   : > { %433 = vmatmul.mubr.f32.gmra.mxu0 %v294_v50  ;;  %580 = vmatprep.subr.mxu1 %v511_v28 }
  0x85   : > { %437 = vmatprep.mubr.f32.mxu0 %v297_v52  ;;  %581 = vmatpush1.msra.mxu1 %v510_v29 }
  0x86   : > { %582 = vmatprep.subr.mxu1 %v509_v30 }
  0x87   : > { %583 = vmatpush1.msra.mxu1 %v508_v31 }
  0x88   : > { %438 = vmatmul.mubr.f32.gmra.mxu0 %v296_v56 }
  0x89   : > { %442 = vmatprep.mubr.f32.mxu0 %v299_v58 }
  0x8c   : > { %443 = vmatmul.mubr.f32.gmra.mxu0 %v298_v62 }
  0x8d   : > { %447 = vmatprep.mubr.f32.mxu0 %v301_v0 }
  0x90   : > { %448 = vmatmul.mubr.f32.gmra.mxu0 %v300_v2 }
  0x91   : > { %452 = vmatprep.mubr.f32.mxu0 %v303_v3 }
  0x94   : > { %453 = vmatmul.mubr.f32.gmra.mxu0 %v302_v4 }
  0x95   : > { %457 = vmatprep.mubr.f32.mxu0 %v305_v5 }
  0x98   : > { %458 = vmatmul.mubr.f32.gmra.mxu0 %v304_v6 }
  0x99   : > { %462 = vmatprep.mubr.f32.mxu0 %v307_v7 }
  0x9c   : > { %463 = vmatmul.mubr.f32.gmra.mxu0 %v306_v8 }
  0x9d   : > { %467 = vmatprep.mubr.f32.mxu0 %v309_v9 }
  0xa0   : > { %468 = vmatmul.mubr.f32.gmra.mxu0 %v308_v10 }
  0xa1   : > { %472 = vmatprep.mubr.f32.mxu0 %v311_v11 }
  0xa4   : > { %473 = vmatmul.mubr.f32.gmra.mxu0 %v310_v12 }
  0xa5   : > { %477 = vmatprep.mubr.f32.mxu0 %v313_v13 }
  0xa8   : > { %478 = vmatmul.mubr.f32.gmra.mxu0 %v312_v14 }
  0xa9   : > { %482 = vmatprep.mubr.f32.mxu0 %v315_v15 }
  0xac   : > { %483 = vmatmul.mubr.f32.gmra.mxu0 %v314_v16 }
  0xad   : > { %487 = vmatprep.mubr.f32.mxu0 %v317_v17 }
  0xb0   : > { %488 = vmatmul.mubr.f32.gmra.mxu0 %v316_v18 }
  0xb1   : > { %492 = vmatprep.mubr.f32.mxu0 %v319_v19 }
  0xb4   : > { %493 = vmatmul.mubr.f32.gmra.mxu0 %v318_v20 }
  0xb5   : > { %497 = vmatprep.mubr.f32.mxu0 %v321_v21 }
  0xb8   : > { %498 = vmatmul.mubr.f32.gmra.mxu0 %v320_v22 }
  0xb9   : > { %502 = vmatprep.mubr.f32.mxu0 %v323_v23 }
  0xbc   : > { %503 = vmatmul.mubr.f32.gmra.mxu0 %v322_v24 }
 0x140   : > { %v960_v33 = vpop.f32.mrf.mxu0 }
 0x142   : > { %v961_v35 = vpop.f32.mrf.mxu0 }
 0x143   : > { %v962_v36 = vadd.f32 %v961_v35, %v960_v33 }
 0x144   : > { %v963_v37 = vpop.f32.mrf.mxu0 }
 0x145   : > { %v430_v38 = vadd.f32 %v962_v36, %v1521_v34  ;;  %v542_v36 = vlaneseq }
 0x146   : > { %v964_v39 = vpop.f32.mrf.mxu0 }
 0x147   : > { %v965_v40 = vadd.f32 %v964_v39, %v963_v37  ;;  %617 = vmatmul.mubr.f32.vlgmr.msra.gmra.mxu1 %v430_v38  ;;  %v543_v37 = vshrl.u32 %v542_v36, 7  ;;  %v540_v39 = vld [vmem:[%s1694_s4] sm:$0x3] }
 0x148   : > { %v966_v41 = vpop.f32.mrf.mxu0  ;;  %622 = vmatprep.mubr.f32.mxu1 %v1298_v32 }
 0x149   : > { %v435_v42 = vadd.f32 %v965_v40, %v1521_v34  ;;  %v544_v38 = vsub.s32 0, %v543_v37  ;;  %v548_v40 = vsub.s32 1, %v543_v37 }
 0x14a   : > { %v967_v43 = vpop.f32.mrf.mxu0 }
 0x14b   : > { %v968_v44 = vadd.f32 %v967_v43, %v966_v41  ;;  %623 = vmatmul.mubr.f32.gmra.mxu1 %v435_v42  ;;  %v1557_v41 = vrot.slane %v540_v39, %v544_v38  ;;  %v1559_v42 = vrot.slane %v540_v39, %v548_v40 }
 0x14c   : > { %v969_v45 = vpop.f32.mrf.mxu0  ;;  %628 = vmatprep.mubr.f32.mxu1 %v1298_v32 }
 0x14d   : > { %v440_v46 = vadd.f32 %v968_v44, %v1521_v34 }
 0x14e   : > { %v970_v47 = vpop.f32.mrf.mxu0 }
 0x14f   : > { %v971_v48 = vadd.f32 %v970_v47, %v969_v45  ;;  %629 = vmatmul.mubr.f32.gmra.mxu1 %v440_v46 }
 0x150   : > { %v972_v49 = vpop.f32.mrf.mxu0  ;;  %634 = vmatprep.mubr.f32.mxu1 %v1298_v32 }
 0x151   : > { %v445_v50 = vadd.f32 %v971_v48, %v1521_v34 }
 0x152   : > { %v973_v51 = vpop.f32.mrf.mxu0 }
 0x153   : > { %v974_v52 = vadd.f32 %v973_v51, %v972_v49  ;;  %635 = vmatmul.mubr.f32.gmra.mxu1 %v445_v50 }
 0x154   : > { %v975_v53 = vpop.f32.mrf.mxu0  ;;  %640 = vmatprep.mubr.f32.mxu1 %v1298_v32 }
 0x155   : > { %v450_v54 = vadd.f32 %v974_v52, %v1521_v34 }
 0x156   : > { %v976_v55 = vpop.f32.mrf.mxu0 }
 0x157   : > { %v977_v56 = vadd.f32 %v976_v55, %v975_v53  ;;  %641 = vmatmul.mubr.f32.gmra.mxu1 %v450_v54 }
 0x158   : > { %v978_v57 = vpop.f32.mrf.mxu0  ;;  %646 = vmatprep.mubr.f32.mxu1 %v1298_v32 }
 0x159   : > { %v455_v58 = vadd.f32 %v977_v56, %v1521_v34 }
 0x15a   : > { %v979_v59 = vpop.f32.mrf.mxu0 }
 0x15b   : > { %v980_v60 = vadd.f32 %v979_v59, %v978_v57  ;;  %647 = vmatmul.mubr.f32.gmra.mxu1 %v455_v58 }
 0x15c   : > { %v981_v61 = vpop.f32.mrf.mxu0  ;;  %652 = vmatprep.mubr.f32.mxu1 %v1298_v32 }
 0x15d   : > { %v460_v62 = vadd.f32 %v980_v60, %v1521_v34 }
 0x15e   : > { %v982_v63 = vpop.f32.mrf.mxu0 }
 0x15f   : > { %v983_v0 = vadd.f32 %v982_v63, %v981_v61  ;;  %653 = vmatmul.mubr.f32.gmra.mxu1 %v460_v62 }
 0x160   : > { %v984_v1 = vpop.f32.mrf.mxu0  ;;  %658 = vmatprep.mubr.f32.mxu1 %v1298_v32 }
 0x161   : > { %v465_v2 = vadd.f32 %v983_v0, %v1521_v34 }
 0x162   : > { %v985_v3 = vpop.f32.mrf.mxu0 }
 0x163   : > { %v986_v4 = vadd.f32 %v985_v3, %v984_v1  ;;  %659 = vmatmul.mubr.f32.gmra.mxu1 %v465_v2 }
 0x164   : > { %v987_v5 = vpop.f32.mrf.mxu0  ;;  %664 = vmatprep.mubr.f32.mxu1 %v1298_v32 }
 0x165   : > { %v470_v6 = vadd.f32 %v986_v4, %v1521_v34 }
 0x166   : > { %v988_v7 = vpop.f32.mrf.mxu0 }
 0x167   : > { %v989_v8 = vadd.f32 %v988_v7, %v987_v5  ;;  %665 = vmatmul.mubr.f32.gmra.mxu1 %v470_v6 }
 0x168   : > { %v990_v9 = vpop.f32.mrf.mxu0  ;;  %670 = vmatprep.mubr.f32.mxu1 %v1298_v32 }
 0x169   : > { %v475_v10 = vadd.f32 %v989_v8, %v1521_v34 }
 0x16a   : > { %v991_v11 = vpop.f32.mrf.mxu0 }
 0x16b   : > { %v992_v12 = vadd.f32 %v991_v11, %v990_v9  ;;  %671 = vmatmul.mubr.f32.gmra.mxu1 %v475_v10 }
 0x16c   : > { %v993_v13 = vpop.f32.mrf.mxu0  ;;  %676 = vmatprep.mubr.f32.mxu1 %v1298_v32 }
 0x16d   : > { %v480_v14 = vadd.f32 %v992_v12, %v1521_v34 }
 0x16e   : > { %v994_v15 = vpop.f32.mrf.mxu0 }
 0x16f   : > { %v995_v16 = vadd.f32 %v994_v15, %v993_v13  ;;  %677 = vmatmul.mubr.f32.gmra.mxu1 %v480_v14 }
 0x170   : > { %v996_v17 = vpop.f32.mrf.mxu0  ;;  %682 = vmatprep.mubr.f32.mxu1 %v1298_v32 }
 0x171   : > { %v485_v18 = vadd.f32 %v995_v16, %v1521_v34 }
 0x172   : > { %v997_v19 = vpop.f32.mrf.mxu0 }
 0x173   : > { %v998_v20 = vadd.f32 %v997_v19, %v996_v17  ;;  %683 = vmatmul.mubr.f32.gmra.mxu1 %v485_v18 }
 0x174   : > { %v999_v21 = vpop.f32.mrf.mxu0  ;;  %688 = vmatprep.mubr.f32.mxu1 %v1298_v32 }
 0x175   : > { %v490_v22 = vadd.f32 %v998_v20, %v1521_v34 }
 0x176   : > { %v1000_v23 = vpop.f32.mrf.mxu0 }
 0x177   : > { %v1001_v24 = vadd.f32 %v1000_v23, %v999_v21  ;;  %689 = vmatmul.mubr.f32.gmra.mxu1 %v490_v22 }
 0x178   : > { %v1002_v25 = vpop.f32.mrf.mxu0  ;;  %694 = vmatprep.mubr.f32.mxu1 %v1298_v32 }
 0x179   : > { %v495_v26 = vadd.f32 %v1001_v24, %v1521_v34 }
 0x17a   : > { %v1003_v27 = vpop.f32.mrf.mxu0 }
 0x17b   : > { %v1004_v28 = vadd.f32 %v1003_v27, %v1002_v25  ;;  %695 = vmatmul.mubr.f32.gmra.mxu1 %v495_v26 }
 0x17c   : > { %v1005_v29 = vpop.f32.mrf.mxu0  ;;  %700 = vmatprep.mubr.f32.mxu1 %v1298_v32 }
 0x17d   : > { %v500_v30 = vadd.f32 %v1004_v28, %v1521_v34 }
 0x17e   : > { %v1006_v31 = vpop.f32.mrf.mxu0 }
 0x17f   : > { %v1007_v33 = vadd.f32 %v1006_v31, %v1005_v29  ;;  %701 = vmatmul.mubr.f32.gmra.mxu1 %v500_v30 }
 0x180   : > { %706 = vmatprep.mubr.f32.mxu1 %v1298_v32 }
 0x181   : > { %v505_v35 = vadd.f32 %v1007_v33, %v1521_v34 }
 0x183   : > { %707 = vmatmul.mubr.f32.gmra.mxu1 %v505_v35 }
 0x207   : > { %v618_v43 = vpop.f32.mrf.mxu1 }
 0x208   : > { %v619_v44 = vadd.f32 %v618_v43, %v1557_v41 }
 0x209   : > { %v620_v45 = vpop.f32.mrf.mxu1 }
 0x20a   : > { %1077 = vtanh.f32 %v619_v44  ;;  %v621_v32 = vadd.f32 %v620_v45, %v1559_v42 }
 0x20b   : > { %v624_v34 = vpop.f32.mrf.mxu1 }
 0x20c   : > { %1079 = vtanh.f32 %v621_v32  ;;  %v625_v46 = vadd.f32 %v624_v34, %v1557_v41 }
 0x20d   : > { %v626_v47 = vpop.f32.mrf.mxu1 }
 0x20e   : > { %1081 = vtanh.f32 %v625_v46  ;;  %v627_v48 = vadd.f32 %v626_v47, %v1559_v42 }
 0x20f   : > { %v630_v49 = vpop.f32.mrf.mxu1 }
 0x210   : > { %1083 = vtanh.f32 %v627_v48  ;;  %v631_v50 = vadd.f32 %v630_v49, %v1557_v41 }
 0x211   : > { %v632_v51 = vpop.f32.mrf.mxu1 }
 0x212   : > { %1085 = vtanh.f32 %v631_v50  ;;  %v633_v52 = vadd.f32 %v632_v51, %v1559_v42 }
 0x213   : > { %v636_v53 = vpop.f32.mrf.mxu1 }
 0x214   : > { %1087 = vtanh.f32 %v633_v52  ;;  %v637_v54 = vadd.f32 %v636_v53, %v1557_v41 }
 0x215   : > { %v638_v55 = vpop.f32.mrf.mxu1 }
 0x216   : > { %1089 = vtanh.f32 %v637_v54  ;;  %v639_v56 = vadd.f32 %v638_v55, %v1559_v42 }
 0x217   : > { %v1078_v57 = vpop.eup %1077  ;;  %v642_v58 = vpop.f32.mrf.mxu1 }
 0x218   : > { %745 = vst [vmem:[%s1571_s26] sm:$0xff] %v1078_v57  ;;  %1091 = vtanh.f32 %v639_v56  ;;  %v643_v59 = vadd.f32 %v642_v58, %v1557_v41 }
 0x219   : > { %v1080_v60 = vpop.eup %1079  ;;  %v644_v61 = vpop.f32.mrf.mxu1 }
 0x21a   : > { %746 = vst [vmem:[%s1571_s26 + $0x8] sm:$0xff] %v1080_v60  ;;  %1093 = vtanh.f32 %v643_v59  ;;  %v645_v62 = vadd.f32 %v644_v61, %v1559_v42 }
 0x21b   : > { %v1082_v63 = vpop.eup %1081  ;;  %v648_v0 = vpop.f32.mrf.mxu1 }
 0x21c   : > { %747 = vst [vmem:[%s1571_s26 + $0x10] sm:$0xff] %v1082_v63  ;;  %1095 = vtanh.f32 %v645_v62  ;;  %v649_v1 = vadd.f32 %v648_v0, %v1557_v41 }
 0x21d   : > { %v1084_v2 = vpop.eup %1083  ;;  %v650_v3 = vpop.f32.mrf.mxu1 }
 0x21e   : > { %748 = vst [vmem:[%s1571_s26 + $0x18] sm:$0xff] %v1084_v2  ;;  %1097 = vtanh.f32 %v649_v1  ;;  %v651_v4 = vadd.f32 %v650_v3, %v1559_v42 }
 0x21f   : > { %v1086_v5 = vpop.eup %1085  ;;  %v654_v6 = vpop.f32.mrf.mxu1 }
 0x220   : > { %749 = vst [vmem:[%s1571_s26 + $0x20] sm:$0xff] %v1086_v5  ;;  %1099 = vtanh.f32 %v651_v4  ;;  %v655_v7 = vadd.f32 %v654_v6, %v1557_v41 }
 0x221   : > { %v1088_v8 = vpop.eup %1087  ;;  %v656_v9 = vpop.f32.mrf.mxu1 }
 0x222   : > { %750 = vst [vmem:[%s1571_s26 + $0x28] sm:$0xff] %v1088_v8  ;;  %1101 = vtanh.f32 %v655_v7  ;;  %v657_v10 = vadd.f32 %v656_v9, %v1559_v42 }
 0x223   : > { %v1090_v11 = vpop.eup %1089  ;;  %v660_v12 = vpop.f32.mrf.mxu1 }
 0x224   : > { %751 = vst [vmem:[%s1571_s26 + $0x30] sm:$0xff] %v1090_v11  ;;  %1103 = vtanh.f32 %v657_v10  ;;  %v661_v13 = vadd.f32 %v660_v12, %v1557_v41 }
 0x225   : > { %v1092_v14 = vpop.eup %1091  ;;  %v662_v15 = vpop.f32.mrf.mxu1 }
 0x226   : > { %752 = vst [vmem:[%s1571_s26 + $0x38] sm:$0xff] %v1092_v14  ;;  %1105 = vtanh.f32 %v661_v13  ;;  %v663_v16 = vadd.f32 %v662_v15, %v1559_v42 }
 0x227   : > { %v1094_v17 = vpop.eup %1093  ;;  %v666_v18 = vpop.f32.mrf.mxu1 }
 0x228   : > { %753 = vst [vmem:[%s1571_s26 + $0x40] sm:$0xff] %v1094_v17  ;;  %1107 = vtanh.f32 %v663_v16  ;;  %v667_v19 = vadd.f32 %v666_v18, %v1557_v41 }
 0x229   : > { %v1096_v20 = vpop.eup %1095  ;;  %v668_v21 = vpop.f32.mrf.mxu1 }
 0x22a   : > { %754 = vst [vmem:[%s1571_s26 + $0x48] sm:$0xff] %v1096_v20  ;;  %1109 = vtanh.f32 %v667_v19  ;;  %v669_v22 = vadd.f32 %v668_v21, %v1559_v42 }
 0x22b   : > { %v1098_v23 = vpop.eup %1097  ;;  %v672_v24 = vpop.f32.mrf.mxu1 }
 0x22c   : > { %755 = vst [vmem:[%s1571_s26 + $0x50] sm:$0xff] %v1098_v23  ;;  %1111 = vtanh.f32 %v669_v22  ;;  %v673_v25 = vadd.f32 %v672_v24, %v1557_v41 }
 0x22d   : > { %v1100_v26 = vpop.eup %1099  ;;  %v674_v27 = vpop.f32.mrf.mxu1 }
 0x22e   : > { %756 = vst [vmem:[%s1571_s26 + $0x58] sm:$0xff] %v1100_v26  ;;  %1113 = vtanh.f32 %v673_v25  ;;  %v675_v28 = vadd.f32 %v674_v27, %v1559_v42 }
 0x22f   : > { %v1102_v29 = vpop.eup %1101  ;;  %v678_v30 = vpop.f32.mrf.mxu1 }
 0x230   : > { %757 = vst [vmem:[%s1571_s26 + $0x60] sm:$0xff] %v1102_v29  ;;  %1115 = vtanh.f32 %v675_v28  ;;  %v679_v31 = vadd.f32 %v678_v30, %v1557_v41 }
 0x231   : > { %v1104_v33 = vpop.eup %1103  ;;  %v680_v35 = vpop.f32.mrf.mxu1 }
 0x232   : > { %758 = vst [vmem:[%s1571_s26 + $0x68] sm:$0xff] %v1104_v33  ;;  %1117 = vtanh.f32 %v679_v31  ;;  %v681_v36 = vadd.f32 %v680_v35, %v1559_v42 }
 0x233   : > { %v1106_v37 = vpop.eup %1105  ;;  %v684_v38 = vpop.f32.mrf.mxu1 }
 0x234   : > { %759 = vst [vmem:[%s1571_s26 + $0x70] sm:$0xff] %v1106_v37  ;;  %1119 = vtanh.f32 %v681_v36  ;;  %v685_v39 = vadd.f32 %v684_v38, %v1557_v41 }
 0x235   : > { %v1108_v40 = vpop.eup %1107  ;;  %v686_v43 = vpop.f32.mrf.mxu1 }
 0x236   : > { %760 = vst [vmem:[%s1571_s26 + $0x78] sm:$0xff] %v1108_v40  ;;  %1121 = vtanh.f32 %v685_v39  ;;  %v687_v44 = vadd.f32 %v686_v43, %v1559_v42 }
 0x237   : > { %v1110_v45 = vpop.eup %1109  ;;  %v690_v32 = vpop.f32.mrf.mxu1 }
 0x238   : > { %761 = vst [vmem:[%s1571_s26 + $0x80] sm:$0xff] %v1110_v45  ;;  %1123 = vtanh.f32 %v687_v44  ;;  %v691_v34 = vadd.f32 %v690_v32, %v1557_v41 }
 0x239   : > { %v1112_v46 = vpop.eup %1111  ;;  %v692_v47 = vpop.f32.mrf.mxu1 }
 0x23a   : > { %762 = vst [vmem:[%s1571_s26 + $0x88] sm:$0xff] %v1112_v46  ;;  %1125 = vtanh.f32 %v691_v34  ;;  %v693_v48 = vadd.f32 %v692_v47, %v1559_v42 }
 0x23b   : > { %v1114_v49 = vpop.eup %1113  ;;  %v696_v50 = vpop.f32.mrf.mxu1 }
 0x23c   : > { %763 = vst [vmem:[%s1571_s26 + $0x90] sm:$0xff] %v1114_v49  ;;  %1127 = vtanh.f32 %v693_v48  ;;  %v697_v51 = vadd.f32 %v696_v50, %v1557_v41 }
 0x23d   : > { %v1116_v52 = vpop.eup %1115  ;;  %v698_v53 = vpop.f32.mrf.mxu1 }
 0x23e   : > { %764 = vst [vmem:[%s1571_s26 + $0x98] sm:$0xff] %v1116_v52  ;;  %1129 = vtanh.f32 %v697_v51  ;;  %v699_v54 = vadd.f32 %v698_v53, %v1559_v42 }
 0x23f   : > { %v1118_v55 = vpop.eup %1117  ;;  %v702_v56 = vpop.f32.mrf.mxu1 }
 0x240   : > { %765 = vst [vmem:[%s1571_s26 + $0xa0] sm:$0xff] %v1118_v55  ;;  %1131 = vtanh.f32 %v699_v54  ;;  %v703_v57 = vadd.f32 %v702_v56, %v1557_v41 }
 0x241   : > { %v1120_v58 = vpop.eup %1119  ;;  %v704_v59 = vpop.f32.mrf.mxu1 }
 0x242   : > { %766 = vst [vmem:[%s1571_s26 + $0xa8] sm:$0xff] %v1120_v58  ;;  %1133 = vtanh.f32 %v703_v57  ;;  %v705_v60 = vadd.f32 %v704_v59, %v1559_v42 }
 0x243   : > { %v1122_v61 = vpop.eup %1121  ;;  %v708_v62 = vpop.f32.mrf.mxu1 }
 0x244   : > { %767 = vst [vmem:[%s1571_s26 + $0xb0] sm:$0xff] %v1122_v61  ;;  %1135 = vtanh.f32 %v705_v60  ;;  %v709_v63 = vadd.f32 %v708_v62, %v1557_v41 }
 0x245   : > { %v1124_v0 = vpop.eup %1123  ;;  %v710_v1 = vpop.f32.mrf.mxu1 }
 0x246   : > { %768 = vst [vmem:[%s1571_s26 + $0xb8] sm:$0xff] %v1124_v0  ;;  %1137 = vtanh.f32 %v709_v63  ;;  %v711_v2 = vadd.f32 %v710_v1, %v1559_v42 }
 0x247   : > { %v1126_v3 = vpop.eup %1125 }
 0x248   : > { %769 = vst [vmem:[%s1571_s26 + $0xc0] sm:$0xff] %v1126_v3  ;;  %1139 = vtanh.f32 %v711_v2 }
 0x249   : > { %v1128_v4 = vpop.eup %1127 }
 0x24a   : > { %770 = vst [vmem:[%s1571_s26 + $0xc8] sm:$0xff] %v1128_v4 }
 0x24b   : > { %v1130_v5 = vpop.eup %1129 }
 0x24c   : > { %771 = vst [vmem:[%s1571_s26 + $0xd0] sm:$0xff] %v1130_v5 }
 0x24d   : > { %v1132_v6 = vpop.eup %1131 }
 0x24e   : > { %772 = vst [vmem:[%s1571_s26 + $0xd8] sm:$0xff] %v1132_v6 }
 0x24f   : > { %v1134_v41 = vpop.eup %1133 }
 0x250   : > { %773 = vst [vmem:[%s1571_s26 + $0xe0] sm:$0xff] %v1134_v41 }
 0x251   : > { %v1136_v7 = vpop.eup %1135 }
 0x252   : > { %774 = vst [vmem:[%s1571_s26 + $0xe8] sm:$0xff] %v1136_v7  ;;  %784 = sbr.rel (!%p1707_p0) target bundleno = 626 (0x272), region = 56 }
 0x253   : > { %v1138_v8 = vpop.eup %1137 }
 0x254   : > { %775 = vst [vmem:[%s1571_s26 + $0xf0] sm:$0xff] %v1138_v8 }
 0x255   : > { %v1140_v9 = vpop.eup %1139 }
 0x256   : > { %776 = vst [vmem:[%s1571_s26 + $0xf8] sm:$0xff] %v1140_v9 }
 0x257   : > { %s1716_s28 = smov (!%p787_p10, %s786_s28), 16 }
 0x258   : > { %s1633_s23 = sshll.u32 %s1716_s28, 8 }
 0x259   : > { %s792_s25 = ssub.s32 4096, %s1633_s23 }
 0x25a   : > { %793 = vsyncadd %s778_s8, %s792_s25  ;;  %p915_p1 = scmp.ne.s32.totalorder %s1633_s23, 0  ;;  %s927_s30 = sshll.u32 %s1353_s22, 12 }
 0x25b   : > { %s1643_s14 = scalar_lea.hbm %s1695_s5, %s927_s30  ;;  %s799_s15 = sshll.u32 %s1571_s26, 4  ;;  %s1646_s15 = int_to_ptr.vmem [resolvable:$true] %s799_s15 }
 0x25c   : > { %s1219_s10 = scalar_lea.vmem %s1646_s15, %s1633_s23  ;;  %s1299_s29 = smov [#allocation8]  }
 0x25d   : > { %p1220_p3 = scmp.ne.s32.totalorder %s1646_s15, %s1219_s10  ;;  %s1223_s7 = sshll.u32 %s1299_s29, 4  ;;  %s1224_s7 = int_to_ptr.vmem [resolvable:$false] %s1223_s7 }
 0x25e   : > { %s1225_s22 = scalar_lea.vmem %s1224_s7, 8192  ;;  %p1226_p12 = scmp.lt.s32.totalorder %s1646_s15, %s1224_s7 }
 0x25f   : > { %p1221_p7 = pnand %p1220_p3, %p915_p1  ;;  %p1227_p8 = scmp.lt.s32.totalorder %s1225_s22, %s1219_s10 }
 0x261   : > { %p1222_p9 = pneg %p1221_p7  ;;  %p1228_p4 = por %p1227_p8, %p1226_p12 }
 0x263   : > { %p1229_p6 = pnand %p1228_p4, %p1222_p9 }
 0x265   : > { %1232 = shalt.err (!%p1229_p6)
}
 0x266   : > { %s1233_s16 = scalar_lea.hbm %s1643_s14, %s1633_s23  ;;  %s1237_s12 = scalar_lea.hbm %s1695_s5, 9728 }
 0x267   : > { %p1234_p11 = scmp.ne.s32.totalorder %s1643_s14, %s1233_s16  ;;  %p1238_p13 = scmp.lt.s32.totalorder %s1643_s14, %s1695_s5 }
 0x268   : > { %p1239_p0 = scmp.lt.s32.totalorder %s1237_s12, %s1233_s16 }
 0x269   : > { %p1235_p2 = pnand %p1234_p11, %p915_p1 }
 0x26a   : > { %p1240_p10 = por %p1239_p0, %p1238_p13 }
 0x26b   : > { %p1236_p5 = pneg %p1235_p2 }
 0x26d   : > { %p1241_p3 = pnand %p1240_p10, %p1236_p5 }
 0x26f   : > { %1244 = shalt.err (!%p1241_p3)
}
 0x270   : > { %s1300_s30 = smov 256   ;;  %s1301_s11 = smov 16  }
 0x271   : > { %805 = dma.vmem_to_hbm [thread:$0]  (%p915_p1), %s1646_s15, %s1633_s23, %s1643_s14, %s778_s8, %s1300_s30, %s1300_s30, %s1301_s11  }
 0x272 PF: > { %p1033_p7 = scmp.ge.s32.totalorder %s1287_s21, 2  ;;  %s814_s9 = sand.u32 1, %s1275_s18  }
 0x273   : > { %p1708_p9 = scmp.ne.s32.totalorder %s1701_s6, 0  ;;  %s815_s10 = scalar_lea.sflag [#allocation4], %s814_s9 }
 0x275   : > { %p1026_p12 = pnand %p1033_p7, %p1708_p9 }
 0x277   : > { %p1027_p8 = pneg %p1026_p12 }
 0x279   : > { %1270 = dma.done.wait (%p1027_p8), %s815_s10, 4096  }
 0x27a   : > { %1272 = vsyncadd (%p1027_p8), %s815_s10, 4294963200  ;;  %p19_p4 = scmp.ge.s32.totalorder %s1357_s24, 5   ;;  %s1709_s18 = smov %s1279_s19 }
 0x27b   : > { %s1710_s19 = smov %s1283_s20  ;;  %s1711_s20 = smov %s1369_s27 }
 0x27c   : > { %s1712_s21 = smov %s1357_s24  ;;  %21 = sbr.rel (!%p19_p4) target bundleno = 6 (0x6), region = 93 }
 0x281   :  { %820 = vsyncpa [#allocation3], 1 }
 0x282   :  { %822 = vsyncpa [#allocation3 + $0x1], 1 }
 0x283   :  { %823 = vsyncpa [#allocation6], 1 }
 0x284   :  { %824 = vsyncpa [#allocation4], 1 }
 0x285   :  { %826 = vsyncpa [#allocation4 + $0x1], 1 }

</bundles_post_ra>
